<compile_context>
chip_gen: v7x
topology: tpu7x:2x2x1
jax: 0.10.0
libtpu: 0.0.40
codegen_flags: <defaults>
</compile_context>

<pallas_src>
import jax
import jax.numpy as jnp
from jax.experimental import pallas as pl
from jax.experimental.pallas import tpu as pltpu


def _round_up(x, m):
    return ((x + m - 1) // m) * m


# ---------------------------------------------------------------------------
# Kernel 1: Jaccard similarity over a lane-dense block of edges.
# Inputs are transposed gathers: xaT/xbT = (F, TE) (features on sublanes, edges
# on lanes); na/nb = per-node nonzero counts gathered per edge, (1, TE).
# Binary features =>  intersection = sum_f xa*xb  (== count_nonzero(xa*xb)).
# ---------------------------------------------------------------------------
def _jaccard_kernel(xa_ref, xb_ref, na_ref, nb_ref, out_ref):
    inter = jnp.sum(xa_ref[...] * xb_ref[...], axis=0, keepdims=True)   # (1, TE)
    denom = na_ref[...] + nb_ref[...] - inter
    # denom == 0 -> NaN -> (NaN > threshold) is False -> edge dropped (matches ref).
    out_ref[...] = inter * pl.reciprocal(denom, approx=True)


def jaccard_sim(xaT, xbT, na, nb, tile_e):
    F, E_pad = xaT.shape
    grid = (E_pad // tile_e,)
    return pl.pallas_call(
        _jaccard_kernel,
        out_shape=jax.ShapeDtypeStruct((1, E_pad), jnp.float32),
        grid=grid,
        in_specs=[
            pl.BlockSpec((F, tile_e), lambda e: (0, e)),
            pl.BlockSpec((F, tile_e), lambda e: (0, e)),
            pl.BlockSpec((1, tile_e), lambda e: (0, e)),
            pl.BlockSpec((1, tile_e), lambda e: (0, e)),
        ],
        out_specs=pl.BlockSpec((1, tile_e), lambda e: (0, e)),
        compiler_params=pltpu.CompilerParams(dimension_semantics=("parallel",)),
    )(xaT, xbT, na, nb)


# ---------------------------------------------------------------------------
# Kernel 2: feature transform with folded normalization:  Hs = dinv ⊙ (X @ W).
# Row-tiled; W stays resident (same block index every step -> no re-DMA).
# ---------------------------------------------------------------------------
def _xw_scale_kernel(x_ref, w_ref, dinv_ref, out_ref):
    h = jnp.dot(x_ref[...], w_ref[...], preferred_element_type=jnp.float32)
    out_ref[...] = dinv_ref[...] * h


def xw_scale(x, w, dinv, tile_n):
    N_pad, Fin = x.shape
    Fp = w.shape[1]
    grid = (N_pad // tile_n,)
    return pl.pallas_call(
        _xw_scale_kernel,
        out_shape=jax.ShapeDtypeStruct((N_pad, Fp), jnp.float32),
        grid=grid,
        in_specs=[
            pl.BlockSpec((tile_n, Fin), lambda i: (i, 0)),
            pl.BlockSpec((Fin, Fp), lambda i: (0, 0)),
            pl.BlockSpec((tile_n, 1), lambda i: (i, 0)),
        ],
        out_specs=pl.BlockSpec((tile_n, Fp), lambda i: (i, 0)),
        compiler_params=pltpu.CompilerParams(dimension_semantics=("parallel",)),
    )(x, w, dinv)


# ---------------------------------------------------------------------------
# Kernel 3: tiled aggregation  out = relu(dinv ⊙ (A' @ Hs) + b).
# A' is the bf16 weighted adjacency (self loops included), tiled (TM, TK);
# f32 VMEM accumulator, pl.when init/finalize over the K (reduction) axis.
# ---------------------------------------------------------------------------
def _agg_kernel(a_ref, hs_ref, dinv_ref, b_ref, out_ref, acc_ref):
    @pl.when(pl.program_id(1) == 0)
    def _():
        acc_ref[...] = jnp.zeros_like(acc_ref)

    acc_ref[...] += jnp.dot(
        a_ref[...], hs_ref[...].astype(jnp.bfloat16),
        preferred_element_type=jnp.float32)

    @pl.when(pl.program_id(1) == pl.num_programs(1) - 1)
    def _():
        out_ref[...] = jnp.maximum(dinv_ref[...] * acc_ref[...] + b_ref[...], 0.0)


def aggregate(adj, hs, dinv, b, tile_n):
    N_pad = adj.shape[0]
    Fp = hs.shape[1]
    grid = (N_pad // tile_n, N_pad // tile_n)
    return pl.pallas_call(
        _agg_kernel,
        out_shape=jax.ShapeDtypeStruct((N_pad, Fp), jnp.float32),
        grid=grid,
        in_specs=[
            pl.BlockSpec((tile_n, tile_n), lambda i, k: (i, k)),
            pl.BlockSpec((tile_n, Fp), lambda i, k: (k, 0)),
            pl.BlockSpec((tile_n, 1), lambda i, k: (i, 0)),
            pl.BlockSpec((1, Fp), lambda i, k: (0, 0)),
        ],
        out_specs=pl.BlockSpec((tile_n, Fp), lambda i, k: (i, 0)),
        scratch_shapes=[pltpu.VMEM((tile_n, Fp), jnp.float32)],
        compiler_params=pltpu.CompilerParams(
            dimension_semantics=("parallel", "arbitrary")),
    )(adj, hs, dinv, b)


# ---------------------------------------------------------------------------
# Full Grace_Jaccard.forward
# ---------------------------------------------------------------------------
def grace_jaccard_forward(x, edge_index, edge_weight, params, threshold,
                          *, tile_n=256, tile_e=256, lane_pad=128):
    N, nfeat = x.shape
    E = edge_index.shape[1]
    src = edge_index[0]
    dst = edge_index[1]
    if edge_weight is None:
        edge_weight = jnp.ones((E,), jnp.float32)

    nhid = params[0][0].shape[1]
    N_pad = _round_up(N, tile_n)
    E_pad = _round_up(E, tile_e)
    Fp = _round_up(nhid, lane_pad)

    # --- prune_unrelated_edge (Jaccard similarity, binary features) ---
    nnz = jnp.count_nonzero(x, axis=1).astype(jnp.float32)          # per-node nnz (glue)
    src_p = jnp.pad(src, (0, E_pad - E))
    dst_p = jnp.pad(dst, (0, E_pad - E))
    xT = x.astype(jnp.float32).T                                    # (F, N)
    # TODO(synk): endpoint gather kept in plain JAX; an in-kernel DMA gather via
    # scalar-prefetched src/dst would avoid materializing the (F, E) arrays in HBM.
    xaT = jnp.take(xT, src_p, axis=1)                               # (F, E_pad)
    xbT = jnp.take(xT, dst_p, axis=1)
    na = jnp.take(nnz, src_p).reshape(1, E_pad)
    nb = jnp.take(nnz, dst_p).reshape(1, E_pad)
    sim = jaccard_sim(xaT, xbT, na, nb, tile_e)[0, :E]              # Pallas kernel 1
    keep = (sim > threshold) & (edge_weight > 0.0)
    w = jnp.where(keep, edge_weight, 0.0).astype(jnp.float32)

    # --- adjacency + gcn_norm data (glue: O(E) scatters, no dense N×N norm pass) ---
    # "add_remaining_self_loops": implicit unit self loop only for nodes without one.
    # TODO(synk): duplicate self-loop edges are summed here, PyG collapses them.
    is_self = ((src == dst) & keep).astype(jnp.float32)
    has_self = jnp.zeros((N_pad,), jnp.float32).at[src].max(is_self)
    loop_w = 1.0 - has_self
    deg = jnp.zeros((N_pad,), jnp.float32).at[dst].add(w) + loop_w
    dinv = jnp.where(deg > 0.0, jax.lax.rsqrt(deg), 0.0).reshape(N_pad, 1)

    adj = jnp.zeros((N_pad, N_pad), jnp.bfloat16)
    adj = adj.at[dst, src].add(w.astype(jnp.bfloat16))
    diag = jnp.arange(N_pad)
    adj = adj.at[diag, diag].add(loop_w.astype(jnp.bfloat16))

    # --- GCN_body: layer=2, relu after each conv ---
    # TODO(synk): F.dropout(training=True) not implemented; eval (identity) semantics.
    h = jnp.pad(x.astype(jnp.float32), ((0, N_pad - N), (0, 0)))
    for (W, b) in params:
        fin = h.shape[1]
        Wp = jnp.zeros((fin, Fp), jnp.float32).at[:W.shape[0], :W.shape[1]].set(W)
        bp = jnp.zeros((1, Fp), jnp.float32).at[0, :b.shape[0]].set(b)
        hs = xw_scale(h, Wp, dinv, tile_n)          # Pallas kernel 2
        h = aggregate(adj, hs, dinv, bp, tile_n)    # Pallas kernel 3
    return h[:N, :nhid]


# ---------------------------------------------------------------------------
# Pure-JAX reference (same semantics) for a sanity check.
# ---------------------------------------------------------------------------
def _reference_forward(x, edge_index, edge_weight, params, threshold):
    N = x.shape[0]
    src, dst = edge_index[0], edge_index[1]
    xa, xb = x[src], x[dst]
    inter = jnp.count_nonzero(xa * xb, axis=1).astype(jnp.float32)
    na = jnp.count_nonzero(xa, axis=1).astype(jnp.float32)
    nb = jnp.count_nonzero(xb, axis=1).astype(jnp.float32)
    sim = inter / (na + nb - inter)
    keep = (sim > threshold) & (edge_weight > 0.0)
    w = jnp.where(keep, edge_weight, 0.0)
    adj = jnp.zeros((N, N), jnp.float32).at[dst, src].add(w)
    is_self = ((src == dst) & keep).astype(jnp.float32)
    has_self = jnp.zeros((N,), jnp.float32).at[src].max(is_self)
    adj = adj + jnp.diag(1.0 - has_self)
    deg = jnp.sum(adj, axis=1)
    dinv = jnp.where(deg > 0.0, 1.0 / jnp.sqrt(deg), 0.0)
    a_hat = dinv[:, None] * adj * dinv[None, :]
    h = x
    for (W, b) in params:
        h = jnp.maximum(a_hat @ (h @ W) + b[None, :], 0.0)
    return h


def init_params(key, nfeat, nhid, layer=2):
    """Deterministic glorot weights / zero bias, matching GCNConv shapes."""
    params = []
    dims = [nfeat] + [nhid] * layer
    for i in range(layer):
        key, sub = jax.random.split(key)
        fan_in, fan_out = dims[i], dims[i + 1]
        limit = jnp.sqrt(6.0 / (fan_in + fan_out))
        W = jax.random.uniform(sub, (fan_in, fan_out), jnp.float32, -limit, limit)
        b = jnp.zeros((fan_out,), jnp.float32)
        params.append((W, b))
    return params


if __name__ == "__main__":
    key = jax.random.PRNGKey(0)

    N, nfeat, nhid, E = 64, 32, 32, 256
    threshold = 0.03

    k1, k2, k3, k4 = jax.random.split(key, 4)
    # binary node features (Cora-like -> binary_feature=True -> Jaccard path)
    x = jax.random.bernoulli(k1, 0.5, (N, nfeat)).astype(jnp.float32)
    src = jax.random.randint(k2, (E,), 0, N)
    dst = jax.random.randint(k3, (E,), 0, N)
    edge_index = jnp.stack([src, dst], axis=0)
    edge_weight = jnp.ones((E,), jnp.float32)

    params = init_params(k4, nfeat, nhid, layer=2)

    fwd = jax.jit(grace_jaccard_forward)
    out = fwd(x, edge_index, edge_weight, params, threshold)
    out = jax.block_until_ready(out)

    assert out.shape == (N, nhid)
    assert bool(jnp.all(jnp.isfinite(out)))

    ref = _reference_forward(x, edge_index, edge_weight, params, threshold)
    assert bool(jnp.allclose(out, ref, rtol=5e-2, atol=1e-2))

    print("KERNEL_OK")
</pallas_src>

<mosaic_0001>
module attributes {stable_mosaic.version = 11 : i64} {
  func.func private @main(%arg0: i32) attributes {dimension_semantics = [#tpu.dimension_semantics<core_parallel>], iteration_bounds = array<i64: 2>, tpu.core_type = #tpu.core_type<sc_scalar_subcore>, window_params = []} {
    return
  }
}

module attributes {stable_mosaic.version = 11 : i64} {
  func.func private @main(%arg0: i32) attributes {dimension_semantics = [#tpu.dimension_semantics<core_parallel>], iteration_bounds = array<i64: 2>, tpu.core_type = #tpu.core_type<sc_scalar_subcore>, window_params = []} {
    return
  }
}

module attributes {stable_mosaic.version = 11 : i64} {
  func.func @_jaccard_kernel(%arg0: i32, %arg1: memref<32x256xf32, #tpu.memory_space<vmem>>, %arg2: memref<32x256xf32, #tpu.memory_space<vmem>>, %arg3: memref<1x256xf32, #tpu.memory_space<vmem>>, %arg4: memref<1x256xf32, #tpu.memory_space<vmem>>, %arg5: memref<1x256xf32, #tpu.memory_space<vmem>>) attributes {dimension_semantics = [#tpu.dimension_semantics<parallel>], iteration_bounds = array<i64: 1>, scalar_prefetch = 0 : i64, scratch_operands = 0 : i64, tpu.core_type = #tpu.core_type<tc>, window_params = [{transform_indices = @transform_0, window_bounds = array<i64: 32, 256>}, {transform_indices = @transform_1, window_bounds = array<i64: 32, 256>}, {transform_indices = @transform_2, window_bounds = array<i64: 1, 256>}, {transform_indices = @transform_3, window_bounds = array<i64: 1, 256>}, {transform_indices = @transform_4, window_bounds = array<i64: 1, 256>}]} {
    %c0 = arith.constant 0 : index
    %c0_0 = arith.constant 0 : index
    %0 = vector.load %arg1[%c0, %c0_0] : memref<32x256xf32, #tpu.memory_space<vmem>>, vector<32x256xf32>
    %c0_1 = arith.constant 0 : index
    %c0_2 = arith.constant 0 : index
    %1 = vector.load %arg2[%c0_1, %c0_2] : memref<32x256xf32, #tpu.memory_space<vmem>>, vector<32x256xf32>
    %2 = arith.mulf %0, %1 : vector<32x256xf32>
    %cst = arith.constant dense<0.000000e+00> : vector<256xf32>
    %3 = vector.multi_reduction <add>, %2, %cst [0] : vector<32x256xf32> to vector<256xf32>
    %4 = vector.shape_cast %3 : vector<256xf32> to vector<1x256xf32>
    %c0_3 = arith.constant 0 : index
    %c0_4 = arith.constant 0 : index
    %5 = vector.load %arg3[%c0_3, %c0_4] : memref<1x256xf32, #tpu.memory_space<vmem>>, vector<1x256xf32>
    %c0_5 = arith.constant 0 : index
    %c0_6 = arith.constant 0 : index
    %6 = vector.load %arg4[%c0_5, %c0_6] : memref<1x256xf32, #tpu.memory_space<vmem>>, vector<1x256xf32>
    %7 = arith.addf %5, %6 : vector<1x256xf32>
    %8 = arith.subf %7, %4 : vector<1x256xf32>
    %9 = tpu.reciprocal %8 {approx = true} : vector<1x256xf32> -> vector<1x256xf32>
    %10 = arith.mulf %4, %9 : vector<1x256xf32>
    %c0_7 = arith.constant 0 : index
    %c0_8 = arith.constant 0 : index
    %11 = vector.load %arg5[%c0_7, %c0_8] : memref<1x256xf32, #tpu.memory_space<vmem>>, vector<1x256xf32>
    tpu.vector_store %arg5[%c0_7, %c0_8], %10 {strides = array<i32>} : memref<1x256xf32, #tpu.memory_space<vmem>>, vector<1x256xf32>,
    return
  }
  func.func @transform_0(%arg0: i32) -> (i32, i32) {
    %c0_i32 = arith.constant 0 : i32
    %c0_i32_0 = arith.constant 0 : i32
    return %c0_i32, %arg0 : i32, i32
  }
  func.func @transform_1(%arg0: i32) -> (i32, i32) {
    %c0_i32 = arith.constant 0 : i32
    %c0_i32_0 = arith.constant 0 : i32
    return %c0_i32, %arg0 : i32, i32
  }
  func.func @transform_2(%arg0: i32) -> (i32, i32) {
    %c0_i32 = arith.constant 0 : i32
    %c0_i32_0 = arith.constant 0 : i32
    return %c0_i32, %arg0 : i32, i32
  }
  func.func @transform_3(%arg0: i32) -> (i32, i32) {
    %c0_i32 = arith.constant 0 : i32
    %c0_i32_0 = arith.constant 0 : i32
    return %c0_i32, %arg0 : i32, i32
  }
  func.func @transform_4(%arg0: i32) -> (i32, i32) {
    %c0_i32 = arith.constant 0 : i32
    %c0_i32_0 = arith.constant 0 : i32
    return %c0_i32, %arg0 : i32, i32
  }
}

module attributes {stable_mosaic.version = 11 : i64} {
  func.func @_agg_kernel(%arg0: i32, %arg1: i32, %arg2: memref<256x256xbf16, #tpu.memory_space<vmem>>, %arg3: memref<256x128xf32, #tpu.memory_space<vmem>>, %arg4: memref<256x1xf32, #tpu.memory_space<vmem>>, %arg5: memref<1x128xf32, #tpu.memory_space<vmem>>, %arg6: memref<256x128xf32, #tpu.memory_space<vmem>>, %arg7: memref<256x128xf32, #tpu.memory_space<vmem>>) attributes {dimension_semantics = [#tpu.dimension_semantics<parallel>, #tpu.dimension_semantics<arbitrary>], iteration_bounds = array<i64: 1, 1>, scalar_prefetch = 0 : i64, scratch_operands = 1 : i64, tpu.core_type = #tpu.core_type<tc>, window_params = [{transform_indices = @transform_0, window_bounds = array<i64: 256, 256>}, {transform_indices = @transform_1, window_bounds = array<i64: 256, 128>}, {transform_indices = @transform_2, window_bounds = array<i64: 256, 1>}, {pipeline_mode = #tpu.pipeline_mode<synchronous>, transform_indices = @transform_3, window_bounds = array<i64: 1, 128>}, {transform_indices = @transform_4, window_bounds = array<i64: 256, 128>}]} {
    %c0_i32 = arith.constant 0 : i32
    %0 = arith.cmpi eq, %arg1, %c0_i32 : i32
    %1 = arith.extui %0 : i1 to i32
    %c0_i32_0 = arith.constant 0 : i32
    %2 = arith.cmpi ne, %1, %c0_i32_0 : i32
    scf.if %2 {
      %cst_10 = arith.constant 0.000000e+00 : f32
      %13 = vector.broadcast %cst_10 : f32 to vector<256x128xf32>
      %c0_11 = arith.constant 0 : index
      %c0_12 = arith.constant 0 : index
      %14 = vector.load %arg7[%c0_11, %c0_12] : memref<256x128xf32, #tpu.memory_space<vmem>>, vector<256x128xf32>
      tpu.vector_store %arg7[%c0_11, %c0_12], %13 {strides = array<i32>} : memref<256x128xf32, #tpu.memory_space<vmem>>, vector<256x128xf32>,
    } else {
    }
    %c0 = arith.constant 0 : index
    %c0_1 = arith.constant 0 : index
    %3 = vector.load %arg7[%c0, %c0_1] : memref<256x128xf32, #tpu.memory_space<vmem>>, vector<256x128xf32>
    %c0_2 = arith.constant 0 : index
    %c0_3 = arith.constant 0 : index
    %4 = vector.load %arg2[%c0_2, %c0_3] : memref<256x256xbf16, #tpu.memory_space<vmem>>, vector<256x256xbf16>
    %c0_4 = arith.constant 0 : index
    %c0_5 = arith.constant 0 : index
    %5 = vector.load %arg3[%c0_4, %c0_5] : memref<256x128xf32, #tpu.memory_space<vmem>>, vector<256x128xf32>
    %6 = arith.truncf %5 : vector<256x128xf32> to vector<256x128xbf16>
    %cst = arith.constant dense<0.000000e+00> : vector<256x128xf32>
    %7 = tpu.matmul %4, %6, %cst {dimension_numbers = #tpu.dot_dimension_numbers<[1], [0], [0], [1], [0, 0, 1, 1], [], []>} : vector<256x256xbf16>, vector<256x128xbf16>, vector<256x128xf32> -> vector<256x128xf32>
    %8 = arith.addf %3, %7 : vector<256x128xf32>
    %c0_6 = arith.constant 0 : index
    %c0_7 = arith.constant 0 : index
    %9 = vector.load %arg7[%c0_6, %c0_7] : memref<256x128xf32, #tpu.memory_space<vmem>>, vector<256x128xf32>
    tpu.vector_store %arg7[%c0_6, %c0_7], %8 {strides = array<i32>} : memref<256x128xf32, #tpu.memory_space<vmem>>, vector<256x128xf32>,
    %c0_i32_8 = arith.constant 0 : i32
    %10 = arith.cmpi eq, %arg1, %c0_i32_8 : i32
    %11 = arith.extui %10 : i1 to i32
    %c0_i32_9 = arith.constant 0 : i32
    %12 = arith.cmpi ne, %11, %c0_i32_9 : i32
    scf.if %12 {
      %c0_10 = arith.constant 0 : index
      %c0_11 = arith.constant 0 : index
      %13 = vector.load %arg4[%c0_10, %c0_11] : memref<256x1xf32, #tpu.memory_space<vmem>>, vector<256x1xf32>
      %c0_12 = arith.constant 0 : index
      %c0_13 = arith.constant 0 : index
      %14 = vector.load %arg7[%c0_12, %c0_13] : memref<256x128xf32, #tpu.memory_space<vmem>>, vector<256x128xf32>
      %15 = vector.broadcast %13 : vector<256x1xf32> to vector<256x128xf32>
      %16 = arith.mulf %15, %14 : vector<256x128xf32>
      %c0_14 = arith.constant 0 : index
      %c0_15 = arith.constant 0 : index
      %17 = vector.load %arg5[%c0_14, %c0_15] : memref<1x128xf32, #tpu.memory_space<vmem>>, vector<1x128xf32>
      %18 = vector.broadcast %17 : vector<1x128xf32> to vector<256x128xf32>
      %19 = arith.addf %16, %18 : vector<256x128xf32>
      %cst_16 = arith.constant 0.000000e+00 : f32
      %20 = vector.broadcast %cst_16 : f32 to vector<256x128xf32>
      %21 = arith.maximumf %19, %20 : vector<256x128xf32>
      %c0_17 = arith.constant 0 : index
      %c0_18 = arith.constant 0 : index
      %22 = vector.load %arg6[%c0_17, %c0_18] : memref<256x128xf32, #tpu.memory_space<vmem>>, vector<256x128xf32>
      tpu.vector_store %arg6[%c0_17, %c0_18], %21 {strides = array<i32>} : memref<256x128xf32, #tpu.memory_space<vmem>>, vector<256x128xf32>,
    } else {
    }
    return
  }
  func.func @transform_0(%arg0: i32, %arg1: i32) -> (i32, i32) {
    %c0_i32 = arith.constant 0 : i32
    return %arg0, %arg1 : i32, i32
  }
  func.func @transform_1(%arg0: i32, %arg1: i32) -> (i32, i32) {
    %c0_i32 = arith.constant 0 : i32
    %c0_i32_0 = arith.constant 0 : i32
    return %arg1, %c0_i32 : i32, i32
  }
  func.func @transform_2(%arg0: i32, %arg1: i32) -> (i32, i32) {
    %c0_i32 = arith.constant 0 : i32
    %c0_i32_0 = arith.constant 0 : i32
    return %arg0, %c0_i32 : i32, i32
  }
  func.func @transform_3(%arg0: i32, %arg1: i32) -> (i32, i32) {
    %c0_i32 = arith.constant 0 : i32
    %c0_i32_0 = arith.constant 0 : i32
    %c0_i32_1 = arith.constant 0 : i32
    return %c0_i32, %c0_i32_0 : i32, i32
  }
  func.func @transform_4(%arg0: i32, %arg1: i32) -> (i32, i32) {
    %c0_i32 = arith.constant 0 : i32
    %c0_i32_0 = arith.constant 0 : i32
    return %arg0, %c0_i32 : i32, i32
  }
}

module attributes {stable_mosaic.version = 11 : i64} {
  func.func @_xw_scale_kernel(%arg0: i32, %arg1: memref<256x32xf32, #tpu.memory_space<vmem>>, %arg2: memref<32x128xf32, #tpu.memory_space<vmem>>, %arg3: memref<256x1xf32, #tpu.memory_space<vmem>>, %arg4: memref<256x128xf32, #tpu.memory_space<vmem>>) attributes {dimension_semantics = [#tpu.dimension_semantics<parallel>], iteration_bounds = array<i64: 1>, scalar_prefetch = 0 : i64, scratch_operands = 0 : i64, tpu.core_type = #tpu.core_type<tc>, window_params = [{transform_indices = @transform_0, window_bounds = array<i64: 256, 32>}, {pipeline_mode = #tpu.pipeline_mode<synchronous>, transform_indices = @transform_1, window_bounds = array<i64: 32, 128>}, {transform_indices = @transform_2, window_bounds = array<i64: 256, 1>}, {transform_indices = @transform_3, window_bounds = array<i64: 256, 128>}]} {
    %c0 = arith.constant 0 : index
    %c0_0 = arith.constant 0 : index
    %0 = vector.load %arg1[%c0, %c0_0] : memref<256x32xf32, #tpu.memory_space<vmem>>, vector<256x32xf32>
    %c0_1 = arith.constant 0 : index
    %c0_2 = arith.constant 0 : index
    %1 = vector.load %arg2[%c0_1, %c0_2] : memref<32x128xf32, #tpu.memory_space<vmem>>, vector<32x128xf32>
    %cst = arith.constant dense<0.000000e+00> : vector<256x128xf32>
    %2 = tpu.matmul %0, %1, %cst {dimension_numbers = #tpu.dot_dimension_numbers<[1], [0], [0], [1], [0, 0, 1, 1], [], []>} : vector<256x32xf32>, vector<32x128xf32>, vector<256x128xf32> -> vector<256x128xf32>
    %c0_3 = arith.constant 0 : index
    %c0_4 = arith.constant 0 : index
    %3 = vector.load %arg3[%c0_3, %c0_4] : memref<256x1xf32, #tpu.memory_space<vmem>>, vector<256x1xf32>
    %4 = vector.broadcast %3 : vector<256x1xf32> to vector<256x128xf32>
    %5 = arith.mulf %4, %2 : vector<256x128xf32>
    %c0_5 = arith.constant 0 : index
    %c0_6 = arith.constant 0 : index
    %6 = vector.load %arg4[%c0_5, %c0_6] : memref<256x128xf32, #tpu.memory_space<vmem>>, vector<256x128xf32>
    tpu.vector_store %arg4[%c0_5, %c0_6], %5 {strides = array<i32>} : memref<256x128xf32, #tpu.memory_space<vmem>>, vector<256x128xf32>,
    return
  }
  func.func @transform_0(%arg0: i32) -> (i32, i32) {
    %c0_i32 = arith.constant 0 : i32
    %c0_i32_0 = arith.constant 0 : i32
    return %arg0, %c0_i32 : i32, i32
  }
  func.func @transform_1(%arg0: i32) -> (i32, i32) {
    %c0_i32 = arith.constant 0 : i32
    %c0_i32_0 = arith.constant 0 : i32
    %c0_i32_1 = arith.constant 0 : i32
    return %c0_i32, %c0_i32_0 : i32, i32
  }
  func.func @transform_2(%arg0: i32) -> (i32, i32) {
    %c0_i32 = arith.constant 0 : i32
    %c0_i32_0 = arith.constant 0 : i32
    return %arg0, %c0_i32 : i32, i32
  }
  func.func @transform_3(%arg0: i32) -> (i32, i32) {
    %c0_i32 = arith.constant 0 : i32
    %c0_i32_0 = arith.constant 0 : i32
    return %arg0, %c0_i32 : i32, i32
  }
}

module attributes {stable_mosaic.version = 11 : i64} {
  func.func @_xw_scale_kernel(%arg0: i32, %arg1: memref<256x128xf32, #tpu.memory_space<vmem>>, %arg2: memref<128x128xf32, #tpu.memory_space<vmem>>, %arg3: memref<256x1xf32, #tpu.memory_space<vmem>>, %arg4: memref<256x128xf32, #tpu.memory_space<vmem>>) attributes {dimension_semantics = [#tpu.dimension_semantics<parallel>], iteration_bounds = array<i64: 1>, scalar_prefetch = 0 : i64, scratch_operands = 0 : i64, tpu.core_type = #tpu.core_type<tc>, window_params = [{transform_indices = @transform_0, window_bounds = array<i64: 256, 128>}, {pipeline_mode = #tpu.pipeline_mode<synchronous>, transform_indices = @transform_1, window_bounds = array<i64: 128, 128>}, {transform_indices = @transform_2, window_bounds = array<i64: 256, 1>}, {transform_indices = @transform_3, window_bounds = array<i64: 256, 128>}]} {
    %c0 = arith.constant 0 : index
    %c0_0 = arith.constant 0 : index
    %0 = vector.load %arg1[%c0, %c0_0] : memref<256x128xf32, #tpu.memory_space<vmem>>, vector<256x128xf32>
    %c0_1 = arith.constant 0 : index
    %c0_2 = arith.constant 0 : index
    %1 = vector.load %arg2[%c0_1, %c0_2] : memref<128x128xf32, #tpu.memory_space<vmem>>, vector<128x128xf32>
    %cst = arith.constant dense<0.000000e+00> : vector<256x128xf32>
    %2 = tpu.matmul %0, %1, %cst {dimension_numbers = #tpu.dot_dimension_numbers<[1], [0], [0], [1], [0, 0, 1, 1], [], []>} : vector<256x128xf32>, vector<128x128xf32>, vector<256x128xf32> -> vector<256x128xf32>
    %c0_3 = arith.constant 0 : index
    %c0_4 = arith.constant 0 : index
    %3 = vector.load %arg3[%c0_3, %c0_4] : memref<256x1xf32, #tpu.memory_space<vmem>>, vector<256x1xf32>
    %4 = vector.broadcast %3 : vector<256x1xf32> to vector<256x128xf32>
    %5 = arith.mulf %4, %2 : vector<256x128xf32>
    %c0_5 = arith.constant 0 : index
    %c0_6 = arith.constant 0 : index
    %6 = vector.load %arg4[%c0_5, %c0_6] : memref<256x128xf32, #tpu.memory_space<vmem>>, vector<256x128xf32>
    tpu.vector_store %arg4[%c0_5, %c0_6], %5 {strides = array<i32>} : memref<256x128xf32, #tpu.memory_space<vmem>>, vector<256x128xf32>,
    return
  }
  func.func @transform_0(%arg0: i32) -> (i32, i32) {
    %c0_i32 = arith.constant 0 : i32
    %c0_i32_0 = arith.constant 0 : i32
    return %arg0, %c0_i32 : i32, i32
  }
  func.func @transform_1(%arg0: i32) -> (i32, i32) {
    %c0_i32 = arith.constant 0 : i32
    %c0_i32_0 = arith.constant 0 : i32
    %c0_i32_1 = arith.constant 0 : i32
    return %c0_i32, %c0_i32_0 : i32, i32
  }
  func.func @transform_2(%arg0: i32) -> (i32, i32) {
    %c0_i32 = arith.constant 0 : i32
    %c0_i32_0 = arith.constant 0 : i32
    return %arg0, %c0_i32 : i32, i32
  }
  func.func @transform_3(%arg0: i32) -> (i32, i32) {
    %c0_i32 = arith.constant 0 : i32
    %c0_i32_0 = arith.constant 0 : i32
    return %arg0, %c0_i32 : i32, i32
  }
}

</mosaic_0001>

<bundles_post_ra>
// kernel: grace_jaccard_forward.5
= control target key start
LH: loop header
LB: loop body
LE: loop exit
PB: predicated region body
PF: predicated region fallthrough
CT: control target
= control target key end

     0   :  { %v125_v34 = vmov 1966171168   ;;  %v68_v36 = vlaneseq  ;;  %s208_s0 = inlined_call_operand.vmem [shape: f32[32,256], index: 0, kind: input, shape index: {}]   ;;  %s209_s1 = inlined_call_operand.vmem [shape: f32[32,256], index: 1, kind: input, shape index: {}]   ;;  %s210_s2 = inlined_call_operand.vmem [shape: f32[1,256], index: 2, kind: input, shape index: {}]   ;;  %s211_s3 = inlined_call_operand.vmem [shape: f32[1,256], index: 3, kind: input, shape index: {}]   ;;  %s212_s4 = inlined_call_operand.vmem [shape: f32[1,256], index: 4, kind: output, shape index: {}]  }
   0x1   :  { %v17_v0 = vld [vmem:[%s208_s0] sm:$0xff]  ;;  %v18_v1 = vld [vmem:[%s208_s0 + $0x8] sm:$0xff]  ;;  %v19_v2 = vld [vmem:[%s208_s0 + $0x10] sm:$0xff]  ;;  %v66_v35 = vunpack.c.l.s4 %v125_v34 }
   0x2   :  { %v20_v3 = vld [vmem:[%s208_s0 + $0x18] sm:$0xff]  ;;  %v21_v4 = vld [vmem:[%s208_s0 + $0x20] sm:$0xff]  ;;  %v22_v5 = vld [vmem:[%s208_s0 + $0x28] sm:$0xff]  ;;  %v69_v42 = vshrl.u32 %v68_v36, 7  ;;  %vm115_vm0 = vcmp.lt.s32.totalorder %v68_v36, 256 }
   0x3   :  { %v23_v6 = vld [vmem:[%s208_s0 + $0x30] sm:$0xff]  ;;  %v24_v7 = vld [vmem:[%s208_s0 + $0x38] sm:$0xff]  ;;  %v25_v8 = vld [vmem:[%s209_s1] sm:$0xff]  ;;  %v67_v41 = vunpack.c.0.s8 %v66_v35 }
   0x4   :  { %v26_v9 = vld [vmem:[%s209_s1 + $0x8] sm:$0xff]  ;;  %v27_v10 = vld [vmem:[%s209_s1 + $0x10] sm:$0xff]  ;;  %v28_v11 = vld [vmem:[%s209_s1 + $0x18] sm:$0xff]  ;;  %v33_v12 = vmul.f32 %v25_v8, %v17_v0  ;;  %v85_v55 = vsub.s32 0, %v69_v42  ;;  %v89_v56 = vsub.s32 1, %v69_v42 }
   0x5   :  { %v29_v13 = vld [vmem:[%s209_s1 + $0x20] sm:$0xff]  ;;  %v30_v14 = vld [vmem:[%s209_s1 + $0x28] sm:$0xff]  ;;  %v31_v15 = vld [vmem:[%s209_s1 + $0x30] sm:$0xff]  ;;  %v34_v16 = vmul.f32 %v26_v9, %v18_v1  ;;  %v35_v17 = vmul.f32 %v27_v10, %v19_v2  ;;  %v36_v18 = vmul.f32 %v28_v11, %v20_v3  ;;  %v70_v47 = vsub.s32 %v67_v41, %v69_v42 }
   0x6   :  { %v32_v19 = vld [vmem:[%s209_s1 + $0x38] sm:$0xff]  ;;  %v37_v20 = vmul.f32 %v29_v13, %v21_v4  ;;  %v38_v21 = vmul.f32 %v30_v14, %v22_v5  ;;  %v39_v22 = vmul.f32 %v31_v15, %v23_v6  ;;  %v59_v48 = vld [vmem:[%s210_s2] sm:$0x3] }
   0x7   :  { %v40_v23 = vmul.f32 %v32_v19, %v24_v7  ;;  %v41_v24 = vadd.f32 %v35_v17, %v33_v12  ;;  %v50_v25 = vadd.f32 %v36_v18, %v34_v16  ;;  %v60_v49 = vld [vmem:[%s211_s3] sm:$0x3] }
   0x8   :  { %v61_v51 = vadd.f32 %v60_v49, %v59_v48 }
   0x9   :  { %v42_v26 = vadd.f32 %v41_v24, %v37_v20  ;;  %v51_v27 = vadd.f32 %v50_v25, %v38_v21 }
   0xb   :  { %v43_v28 = vadd.f32 %v42_v26, %v39_v22  ;;  %v52_v29 = vadd.f32 %v51_v27, %v40_v23 }
   0xd   :  { %v44_v30 = vrot.slane %v43_v28, 4  ;;  %v53_v31 = vrot.slane %v52_v29, 4 }
   0xf   :  { %v45_v32 = vadd.f32 %v44_v30, %v43_v28  ;;  %v54_v33 = vadd.f32 %v53_v31, %v52_v29 }
  0x11   :  { %v46_v37 = vrot.slane %v45_v32, 2  ;;  %v55_v38 = vrot.slane %v54_v33, 2 }
  0x13   :  { %v47_v39 = vadd.f32 %v46_v37, %v45_v32  ;;  %v56_v40 = vadd.f32 %v55_v38, %v54_v33 }
  0x15   :  { %v48_v43 = vrot.slane %v47_v39, 1  ;;  %v57_v44 = vrot.slane %v56_v40, 1 }
  0x17   :  { %v49_v45 = vadd.f32 %v48_v43, %v47_v39  ;;  %v58_v46 = vadd.f32 %v57_v44, %v56_v40 }
  0x19   :  { %v64_v50 = vcombine.low %v49_v45, %v58_v46 }
  0x1b   :  { %v71_v52 = vrot.slane %v64_v50, %v70_v47 }
  0x1d   :  { %v78_v53 = vrot.slane %v71_v52, %v70_v47 }
  0x1f   :  { %v80_v54 = vsub.f32 %v61_v51, %v78_v53 }
  0x21   :  { %123 = vrcp.f32 %v80_v54 }
  0x2b   :  { %v124_v57 = vpop.eup %123 }
  0x2c   :  { %v86_v58 = vrot.slane %v124_v57, %v85_v55  ;;  %v90_v59 = vrot.slane %v124_v57, %v89_v56 }
  0x2e   :  { %v93_v60 = vmul.f32 %v86_v58, %v49_v45  ;;  %v94_v61 = vmul.f32 %v90_v59, %v58_v46 }
  0x30   :  { %v97_v62 = vcombine.low %v93_v60, %v94_v61 }
  0x32   :  { %v104_v63 = vrot.slane %v97_v62, %v70_v47 }
  0x34   :  { %v111_v0 = vrot.slane %v104_v63, %v70_v47 }
  0x36   :  { %117 = vst.msk [vmem:[%s212_s4] sm:$0x3] %vm115_vm0, %v111_v0 }

// kernel: grace_jaccard_forward.6
= control target key start
LH: loop header
LB: loop body
LE: loop exit
PB: predicated region body
PF: predicated region fallthrough
CT: control target
= control target key end

     0   :  { %v771_v0 = vmov 0   ;;  %vm50_vm0 = vcmask 261120   ;;  %s1151_s1 = inlined_call_operand.vmem [shape: f32[32,128], index: 1, kind: input, shape index: {}]   ;;  %s1152_s2 = inlined_call_operand.vmem [shape: f32[256,1], index: 2, kind: input, shape index: {}]   ;;  %s1153_s0 = inlined_call_operand.vmem [shape: f32[256,32], index: 0, kind: input, shape index: {}]   ;;  %s1154_s3 = inlined_call_operand.vmem [shape: f32[256,128], index: 3, kind: output, shape index: {}]  }
   0x1   :  { %770 = vset.pattern.permute.xlu1 %v771_v0  ;;  %769 = vset.pattern.permute.xlu0 %v771_v0  ;;  %v46_v1 = vld [vmem:[%s1151_s1] sm:$0xff]  ;;  %v47_v2 = vld [vmem:[%s1151_s1 + $0x8] sm:$0xff]  ;;  %v374_v3 = vld [vmem:[%s1152_s2 + $0x10] sm:$0xff] }
   0x2   :  { %v756_v4 = vpack.c.bf16 %v47_v2, %v46_v1  ;;  %416 = vperm.xlu1 %770, %v374_v3   ;;  %v372_v5 = vld [vmem:[%s1152_s2] sm:$0xff]  ;;  %v48_v6 = vld [vmem:[%s1151_s1 + $0x10] sm:$0xff]  ;;  %v49_v7 = vld [vmem:[%s1151_s1 + $0x18] sm:$0xff] }
   0x3   :  { %406 = vperm.xlu0 %769, %v372_v5   ;;  %v760_v8 = vpack.c.bf16 %v49_v7, %v48_v6  ;;  %v375_v9 = vld [vmem:[%s1152_s2 + $0x18] sm:$0xff]  ;;  %v373_v10 = vld [vmem:[%s1152_s2 + $0x8] sm:$0xff]  ;;  %v14_v11 = vld [vmem:[%s1153_s0] sm:$0xff] }
   0x4   :  { %757 = vmatprep.subr.bf16.mxu0 %v756_v4  ;;  %764 = vmatprep.subr.bf16.mxu1 %v756_v4  ;;  %v30_v12 = vld [vmem:[%s1153_s0 + $0x80] sm:$0xff]  ;;  %v377_v13 = vld [vmem:[%s1152_s2 + $0x28] sm:$0xff]  ;;  %v16_v17 = vld [vmem:[%s1153_s0 + $0x10] sm:$0xff] }
   0x5   :  { %759 = vmatpush3.bf16.msra.mxu0 %v756_v4  ;;  %766 = vmatpush3.bf16.msra.mxu1 %v756_v4  ;;  %v376_v14 = vld [vmem:[%s1152_s2 + $0x20] sm:$0xff]  ;;  %v15_v15 = vld [vmem:[%s1153_s0 + $0x8] sm:$0xff]  ;;  %v32_v18 = vld [vmem:[%s1153_s0 + $0x90] sm:$0xff] }
   0x6   :  { %761 = vmatprep.subr.bf16.mxu0 %v760_v8  ;;  %765 = vmatprep.subr.bf16.mxu1 %v760_v8  ;;  %v31_v16 = vld [vmem:[%s1153_s0 + $0x88] sm:$0xff]  ;;  %v379_v19 = vld [vmem:[%s1152_s2 + $0x38] sm:$0xff]  ;;  %v378_v20 = vld [vmem:[%s1152_s2 + $0x30] sm:$0xff] }
   0x7   :  { %421 = vperm.xlu1 %770, %v375_v9   ;;  %411 = vperm.xlu0 %769, %v373_v10   ;;  %v17_v21 = vld [vmem:[%s1153_s0 + $0x18] sm:$0xff]  ;;  %v18_v23 = vld [vmem:[%s1153_s0 + $0x20] sm:$0xff]  ;;  %v381_v25 = vld [vmem:[%s1152_s2 + $0x48] sm:$0xff] }
   0x8   :  { %708 = vmatprep.mubr.msk.f32.mxu0 %vm50_vm0, %v14_v11  ;;  %732 = vmatprep.mubr.msk.f32.mxu1 %vm50_vm0, %v30_v12  ;;  %v33_v22 = vld [vmem:[%s1153_s0 + $0x98] sm:$0xff]  ;;  %v34_v24 = vld [vmem:[%s1153_s0 + $0xa0] sm:$0xff]  ;;  %v19_v27 = vld [vmem:[%s1153_s0 + $0x28] sm:$0xff] }
   0x9   :  { %763 = vmatpush3.bf16.msra.mxu0 %v760_v8  ;;  %767 = vmatpush3.bf16.msra.mxu1 %v760_v8  ;;  %v380_v26 = vld [vmem:[%s1152_s2 + $0x40] sm:$0xff]  ;;  %v35_v28 = vld [vmem:[%s1153_s0 + $0xa8] sm:$0xff]  ;;  %v20_v29 = vld [vmem:[%s1153_s0 + $0x30] sm:$0xff] }
   0xa   :  { %v36_v30 = vld [vmem:[%s1153_s0 + $0xb0] sm:$0xff]  ;;  %v383_v31 = vld [vmem:[%s1152_s2 + $0x58] sm:$0xff]  ;;  %v22_v35 = vld [vmem:[%s1153_s0 + $0x40] sm:$0xff] }
   0xb   :  { %431 = vperm.xlu1 %770, %v377_v13   ;;  %426 = vperm.xlu0 %769, %v376_v14   ;;  %v382_v32 = vld [vmem:[%s1152_s2 + $0x50] sm:$0xff]  ;;  %v21_v33 = vld [vmem:[%s1153_s0 + $0x38] sm:$0xff]  ;;  %v38_v36 = vld [vmem:[%s1153_s0 + $0xc0] sm:$0xff] }
   0xc   :  { %709 = vmatmul.mubr.msk.f32.vlgmr.msra.gmra.mrb[0].mxu0 %vm50_vm0, %v15_v15  ;;  %733 = vmatmul.mubr.msk.f32.vlgmr.msra.gmra.mrb[0].mxu1 %vm50_vm0, %v31_v16  ;;  %v37_v34 = vld [vmem:[%s1153_s0 + $0xb8] sm:$0xff]  ;;  %v385_v37 = vld [vmem:[%s1152_s2 + $0x68] sm:$0xff]  ;;  %v384_v38 = vld [vmem:[%s1152_s2 + $0x60] sm:$0xff] }
   0xd   :  { %711 = vmatprep.mubr.msk.f32.mxu0 %vm50_vm0, %v16_v17  ;;  %735 = vmatprep.mubr.msk.f32.mxu1 %vm50_vm0, %v32_v18  ;;  %v23_v39 = vld [vmem:[%s1153_s0 + $0x48] sm:$0xff]  ;;  %v24_v41 = vld [vmem:[%s1153_s0 + $0x50] sm:$0xff]  ;;  %v387_v43 = vld [vmem:[%s1152_s2 + $0x78] sm:$0xff] }
   0xe   :  { %v39_v40 = vld [vmem:[%s1153_s0 + $0xc8] sm:$0xff]  ;;  %v40_v42 = vld [vmem:[%s1153_s0 + $0xd0] sm:$0xff]  ;;  %v25_v45 = vld [vmem:[%s1153_s0 + $0x58] sm:$0xff] }
   0xf   :  { %441 = vperm.xlu1 %770, %v379_v19   ;;  %436 = vperm.xlu0 %769, %v378_v20   ;;  %v386_v44 = vld [vmem:[%s1152_s2 + $0x70] sm:$0xff]  ;;  %v41_v46 = vld [vmem:[%s1153_s0 + $0xd8] sm:$0xff]  ;;  %v26_v47 = vld [vmem:[%s1153_s0 + $0x60] sm:$0xff] }
  0x10   :  { %712 = vmatmul.mubr.msk.f32.gmra.mrb[2].mxu0 %vm50_vm0, %v17_v21  ;;  %736 = vmatmul.mubr.msk.f32.gmra.mrb[2].mxu1 %vm50_vm0, %v33_v22  ;;  %v42_v48 = vld [vmem:[%s1153_s0 + $0xe0] sm:$0xff]  ;;  %v389_v49 = vld [vmem:[%s1152_s2 + $0x88] sm:$0xff]  ;;  %v28_v53 = vld [vmem:[%s1153_s0 + $0x70] sm:$0xff] }
  0x11   :  { %714 = vmatprep.mubr.msk.f32.mxu0 %vm50_vm0, %v18_v23  ;;  %738 = vmatprep.mubr.msk.f32.mxu1 %vm50_vm0, %v34_v24  ;;  %v388_v50 = vld [vmem:[%s1152_s2 + $0x80] sm:$0xff]  ;;  %v27_v51 = vld [vmem:[%s1153_s0 + $0x68] sm:$0xff]  ;;  %v44_v54 = vld [vmem:[%s1153_s0 + $0xf0] sm:$0xff] }
  0x12   :  { %v43_v52 = vld [vmem:[%s1153_s0 + $0xe8] sm:$0xff]  ;;  %v391_v55 = vld [vmem:[%s1152_s2 + $0x98] sm:$0xff]  ;;  %v390_v56 = vld [vmem:[%s1152_s2 + $0x90] sm:$0xff] }
  0x13   :  { %451 = vperm.xlu1 %770, %v381_v25   ;;  %446 = vperm.xlu0 %769, %v380_v26   ;;  %v29_v57 = vld [vmem:[%s1153_s0 + $0x78] sm:$0xff]  ;;  %v393_v59 = vld [vmem:[%s1152_s2 + $0xa8] sm:$0xff]  ;;  %v392_v60 = vld [vmem:[%s1152_s2 + $0xa0] sm:$0xff] }
  0x14   :  { %715 = vmatmul.mubr.msk.f32.gmra.mrb[4].mxu0 %vm50_vm0, %v19_v27  ;;  %739 = vmatmul.mubr.msk.f32.gmra.mrb[4].mxu1 %vm50_vm0, %v35_v28  ;;  %v45_v58 = vld [vmem:[%s1153_s0 + $0xf8] sm:$0xff]  ;;  %v394_v62 = vld [vmem:[%s1152_s2 + $0xb0] sm:$0xff]  ;;  %v397_v63 = vld [vmem:[%s1152_s2 + $0xc8] sm:$0xff] }
  0x15   :  { %717 = vmatprep.mubr.msk.f32.mxu0 %vm50_vm0, %v20_v29  ;;  %741 = vmatprep.mubr.msk.f32.mxu1 %vm50_vm0, %v36_v30  ;;  %v395_v61 = vld [vmem:[%s1152_s2 + $0xb8] sm:$0xff]  ;;  %v396_v0 = vld [vmem:[%s1152_s2 + $0xc0] sm:$0xff]  ;;  %v398_v2 = vld [vmem:[%s1152_s2 + $0xd0] sm:$0xff] }
  0x16   :  { %v399_v1 = vld [vmem:[%s1152_s2 + $0xd8] sm:$0xff]  ;;  %v401_v3 = vld [vmem:[%s1152_s2 + $0xe8] sm:$0xff]  ;;  %v400_v4 = vld [vmem:[%s1152_s2 + $0xe0] sm:$0xff] }
  0x17   :  { %461 = vperm.xlu1 %770, %v383_v31   ;;  %456 = vperm.xlu0 %769, %v382_v32   ;;  %v403_v5 = vld [vmem:[%s1152_s2 + $0xf8] sm:$0xff]  ;;  %v402_v6 = vld [vmem:[%s1152_s2 + $0xf0] sm:$0xff] }
  0x18   :  { %718 = vmatmul.mubr.msk.f32.gmra.mrb[6].mxu0 %vm50_vm0, %v21_v33  ;;  %742 = vmatmul.mubr.msk.f32.gmra.mrb[6].mxu1 %vm50_vm0, %v37_v34 }
  0x19   :  { %720 = vmatprep.mubr.msk.f32.mxu0 %vm50_vm0, %v22_v35  ;;  %744 = vmatprep.mubr.msk.f32.mxu1 %vm50_vm0, %v38_v36 }
  0x1b   :  { %471 = vperm.xlu1 %770, %v385_v37   ;;  %466 = vperm.xlu0 %769, %v384_v38  }
  0x1c   :  { %721 = vmatmul.mubr.msk.f32.gmra.mrb[8].mxu0 %vm50_vm0, %v23_v39  ;;  %745 = vmatmul.mubr.msk.f32.gmra.mrb[8].mxu1 %vm50_vm0, %v39_v40 }
  0x1d   :  { %723 = vmatprep.mubr.msk.f32.mxu0 %vm50_vm0, %v24_v41  ;;  %747 = vmatprep.mubr.msk.f32.mxu1 %vm50_vm0, %v40_v42 }
  0x1f   :  { %481 = vperm.xlu1 %770, %v387_v43   ;;  %476 = vperm.xlu0 %769, %v386_v44  }
  0x20   :  { %724 = vmatmul.mubr.msk.f32.gmra.mrb[10].mxu0 %vm50_vm0, %v25_v45  ;;  %748 = vmatmul.mubr.msk.f32.gmra.mrb[10].mxu1 %vm50_vm0, %v41_v46 }
  0x21   :  { %726 = vmatprep.mubr.msk.f32.mxu0 %vm50_vm0, %v26_v47  ;;  %750 = vmatprep.mubr.msk.f32.mxu1 %vm50_vm0, %v42_v48 }
  0x23   :  { %491 = vperm.xlu1 %770, %v389_v49   ;;  %486 = vperm.xlu0 %769, %v388_v50  }
  0x24   :  { %727 = vmatmul.mubr.msk.f32.gmra.mrb[12].mxu0 %vm50_vm0, %v27_v51  ;;  %751 = vmatmul.mubr.msk.f32.gmra.mrb[12].mxu1 %vm50_vm0, %v43_v52 }
  0x25   :  { %729 = vmatprep.mubr.msk.f32.mxu0 %vm50_vm0, %v28_v53  ;;  %753 = vmatprep.mubr.msk.f32.mxu1 %vm50_vm0, %v44_v54 }
  0x27   :  { %501 = vperm.xlu1 %770, %v391_v55   ;;  %496 = vperm.xlu0 %769, %v390_v56  }
  0x28   :  { %730 = vmatmul.mubr.msk.f32.gmra.mrb[14].mxu0 %vm50_vm0, %v29_v57  ;;  %754 = vmatmul.mubr.msk.f32.gmra.mrb[14].mxu1 %vm50_vm0, %v45_v58 }
  0x2b   :  { %511 = vperm.xlu1 %770, %v393_v59   ;;  %506 = vperm.xlu0 %769, %v392_v60  }
  0x2f   :  { %521 = vperm.xlu1 %770, %v395_v61   ;;  %516 = vperm.xlu0 %769, %v394_v62  }
  0x33   :  { %531 = vperm.xlu1 %770, %v397_v63   ;;  %526 = vperm.xlu0 %769, %v396_v0  }
  0x37   :  { %541 = vperm.xlu1 %770, %v399_v1   ;;  %536 = vperm.xlu0 %769, %v398_v2  }
  0x3b   :  { %551 = vperm.xlu1 %770, %v401_v3   ;;  %546 = vperm.xlu0 %769, %v400_v4  }
  0x3f   :  { %561 = vperm.xlu1 %770, %v403_v5   ;;  %556 = vperm.xlu0 %769, %v402_v6  }
  0x81   :  { %v417_v7 = vpop.permute.xlu1 %416 }
  0x82   :  { %v407_v8 = vpop.permute.xlu0 %406 }
  0x86   :  { %v422_v9 = vpop.permute.xlu1 %421  ;;  %v412_v10 = vpop.permute.xlu0 %411 }
  0x8a   :  { %v432_v11 = vpop.permute.xlu1 %431  ;;  %v427_v12 = vpop.permute.xlu0 %426 }
  0x8e   :  { %v442_v13 = vpop.permute.xlu1 %441  ;;  %v1028_v14 = vpop.permute.xlu0 %436 }
  0x92   :  { %v1030_v15 = vpop.permute.xlu1 %451  ;;  %v1032_v16 = vpop.permute.xlu0 %446 }
  0x96   :  { %v1034_v17 = vpop.permute.xlu1 %461  ;;  %v1036_v18 = vpop.permute.xlu0 %456 }
  0x9a   :  { %v1038_v19 = vpop.permute.xlu1 %471  ;;  %v1040_v20 = vpop.permute.xlu0 %466 }
  0x9e   :  { %v1042_v21 = vpop.permute.xlu1 %481  ;;  %v1044_v22 = vpop.permute.xlu0 %476 }
  0xa2   :  { %v492_v23 = vpop.permute.xlu1 %491  ;;  %v487_v24 = vpop.permute.xlu0 %486 }
  0xa6   :  { %v502_v25 = vpop.permute.xlu1 %501  ;;  %v497_v26 = vpop.permute.xlu0 %496 }
  0xaa   :  { %v512_v27 = vpop.permute.xlu1 %511  ;;  %v507_v28 = vpop.permute.xlu0 %506 }
  0xae   :  { %v522_v29 = vpop.permute.xlu1 %521  ;;  %v517_v30 = vpop.permute.xlu0 %516 }
  0xb2   :  { %v532_v39 = vpop.permute.xlu1 %531  ;;  %v527_v40 = vpop.permute.xlu0 %526 }
  0xb6   :  { %v542_v57 = vpop.permute.xlu1 %541  ;;  %v537_v58 = vpop.permute.xlu0 %536 }
  0xdf   :  { %v710_v31 = vpop.f32.mrb[0].mxu0  ;;  %v734_v32 = vpop.f32.mrb[0].mxu1 }
  0xe0   :  { %v565_v33 = vmul.f32 %v710_v31, %v412_v10  ;;  %v581_v34 = vmul.f32 %v734_v32, %v492_v23  ;;  %v213_v35 = vpop.f32.mrb[1].mxu0  ;;  %v293_v36 = vpop.f32.mrb[1].mxu1 }
  0xe1   :  { %v564_v37 = vmul.f32 %v407_v8, %v213_v35  ;;  %v580_v38 = vmul.f32 %v487_v24, %v293_v36 }
  0xe2   :  { %597 = vst [vmem:[%s1154_s3 + $0x8] sm:$0xff] %v565_v33  ;;  %613 = vst [vmem:[%s1154_s3 + $0x88] sm:$0xff] %v581_v34 }
  0xe3   :  { %596 = vst [vmem:[%s1154_s3] sm:$0xff] %v564_v37  ;;  %612 = vst [vmem:[%s1154_s3 + $0x80] sm:$0xff] %v580_v38  ;;  %v713_v41 = vpop.f32.mrb[2].mxu0  ;;  %v737_v42 = vpop.f32.mrb[2].mxu1 }
  0xe4   :  { %v567_v43 = vmul.f32 %v713_v41, %v422_v9  ;;  %v583_v44 = vmul.f32 %v737_v42, %v502_v25  ;;  %v223_v45 = vpop.f32.mrb[3].mxu0  ;;  %v303_v46 = vpop.f32.mrb[3].mxu1 }
  0xe5   :  { %v566_v47 = vmul.f32 %v417_v7, %v223_v45  ;;  %v582_v48 = vmul.f32 %v497_v26, %v303_v46 }
  0xe6   :  { %599 = vst [vmem:[%s1154_s3 + $0x18] sm:$0xff] %v567_v43  ;;  %615 = vst [vmem:[%s1154_s3 + $0x98] sm:$0xff] %v583_v44 }
  0xe7   :  { %598 = vst [vmem:[%s1154_s3 + $0x10] sm:$0xff] %v566_v47  ;;  %614 = vst [vmem:[%s1154_s3 + $0x90] sm:$0xff] %v582_v48  ;;  %v716_v49 = vpop.f32.mrb[4].mxu0  ;;  %v740_v50 = vpop.f32.mrb[4].mxu1 }
  0xe8   :  { %v569_v51 = vmul.f32 %v716_v49, %v432_v11  ;;  %v585_v52 = vmul.f32 %v740_v50, %v512_v27  ;;  %v233_v53 = vpop.f32.mrb[5].mxu0  ;;  %v313_v54 = vpop.f32.mrb[5].mxu1 }
  0xe9   :  { %v568_v55 = vmul.f32 %v427_v12, %v233_v53  ;;  %v584_v56 = vmul.f32 %v507_v28, %v313_v54  ;;  %v552_v11 = vpop.permute.xlu1 %551  ;;  %v547_v12 = vpop.permute.xlu0 %546 }
  0xea   :  { %601 = vst [vmem:[%s1154_s3 + $0x28] sm:$0xff] %v569_v51  ;;  %617 = vst [vmem:[%s1154_s3 + $0xa8] sm:$0xff] %v585_v52 }
  0xeb   :  { %600 = vst [vmem:[%s1154_s3 + $0x20] sm:$0xff] %v568_v55  ;;  %616 = vst [vmem:[%s1154_s3 + $0xa0] sm:$0xff] %v584_v56  ;;  %v719_v59 = vpop.f32.mrb[6].mxu0  ;;  %v743_v60 = vpop.f32.mrb[6].mxu1 }
  0xec   :  { %v571_v61 = vmul.f32 %v719_v59, %v442_v13  ;;  %v587_v62 = vmul.f32 %v743_v60, %v522_v29  ;;  %v243_v63 = vpop.f32.mrb[7].mxu0  ;;  %v323_v0 = vpop.f32.mrb[7].mxu1 }
  0xed   :  { %v570_v1 = vmul.f32 %v1028_v14, %v243_v63  ;;  %v586_v2 = vmul.f32 %v517_v30, %v323_v0  ;;  %v562_v33 = vpop.permute.xlu1 %561  ;;  %v557_v34 = vpop.permute.xlu0 %556 }
  0xee   :  { %603 = vst [vmem:[%s1154_s3 + $0x38] sm:$0xff] %v571_v61  ;;  %619 = vst [vmem:[%s1154_s3 + $0xb8] sm:$0xff] %v587_v62 }
  0xef   :  { %602 = vst [vmem:[%s1154_s3 + $0x30] sm:$0xff] %v570_v1  ;;  %618 = vst [vmem:[%s1154_s3 + $0xb0] sm:$0xff] %v586_v2  ;;  %v722_v3 = vpop.f32.mrb[8].mxu0  ;;  %v746_v4 = vpop.f32.mrb[8].mxu1 }
  0xf0   :  { %v573_v5 = vmul.f32 %v722_v3, %v1030_v15  ;;  %v589_v6 = vmul.f32 %v746_v4, %v532_v39  ;;  %v253_v7 = vpop.f32.mrb[9].mxu0  ;;  %v333_v8 = vpop.f32.mrb[9].mxu1 }
  0xf1   :  { %v572_v9 = vmul.f32 %v1032_v16, %v253_v7  ;;  %v588_v10 = vmul.f32 %v527_v40, %v333_v8 }
  0xf2   :  { %605 = vst [vmem:[%s1154_s3 + $0x48] sm:$0xff] %v573_v5  ;;  %621 = vst [vmem:[%s1154_s3 + $0xc8] sm:$0xff] %v589_v6 }
  0xf3   :  { %604 = vst [vmem:[%s1154_s3 + $0x40] sm:$0xff] %v572_v9  ;;  %620 = vst [vmem:[%s1154_s3 + $0xc0] sm:$0xff] %v588_v10  ;;  %v725_v13 = vpop.f32.mrb[10].mxu0  ;;  %v749_v14 = vpop.f32.mrb[10].mxu1 }
  0xf4   :  { %v575_v15 = vmul.f32 %v725_v13, %v1034_v17  ;;  %v591_v16 = vmul.f32 %v749_v14, %v542_v57  ;;  %v263_v23 = vpop.f32.mrb[11].mxu0  ;;  %v343_v24 = vpop.f32.mrb[11].mxu1 }
  0xf5   :  { %v574_v25 = vmul.f32 %v1036_v18, %v263_v23  ;;  %v590_v26 = vmul.f32 %v537_v58, %v343_v24 }
  0xf6   :  { %607 = vst [vmem:[%s1154_s3 + $0x58] sm:$0xff] %v575_v15  ;;  %623 = vst [vmem:[%s1154_s3 + $0xd8] sm:$0xff] %v591_v16 }
  0xf7   :  { %606 = vst [vmem:[%s1154_s3 + $0x50] sm:$0xff] %v574_v25  ;;  %622 = vst [vmem:[%s1154_s3 + $0xd0] sm:$0xff] %v590_v26  ;;  %v728_v17 = vpop.f32.mrb[12].mxu0  ;;  %v752_v27 = vpop.f32.mrb[12].mxu1 }
  0xf8   :  { %v577_v18 = vmul.f32 %v728_v17, %v1038_v19  ;;  %v593_v28 = vmul.f32 %v752_v27, %v552_v11  ;;  %v273_v29 = vpop.f32.mrb[13].mxu0  ;;  %v353_v30 = vpop.f32.mrb[13].mxu1 }
  0xf9   :  { %v576_v31 = vmul.f32 %v1040_v20, %v273_v29  ;;  %v592_v32 = vmul.f32 %v547_v12, %v353_v30 }
  0xfa   :  { %609 = vst [vmem:[%s1154_s3 + $0x68] sm:$0xff] %v577_v18  ;;  %625 = vst [vmem:[%s1154_s3 + $0xe8] sm:$0xff] %v593_v28 }
  0xfb   :  { %608 = vst [vmem:[%s1154_s3 + $0x60] sm:$0xff] %v576_v31  ;;  %624 = vst [vmem:[%s1154_s3 + $0xe0] sm:$0xff] %v592_v32  ;;  %v731_v19 = vpop.f32.mrb[14].mxu0  ;;  %v755_v20 = vpop.f32.mrb[14].mxu1 }
  0xfc   :  { %v579_v35 = vmul.f32 %v731_v19, %v1042_v21  ;;  %v595_v36 = vmul.f32 %v755_v20, %v562_v33  ;;  %v283_v37 = vpop.f32.mrb[15].mxu0  ;;  %v363_v38 = vpop.f32.mrb[15].mxu1 }
  0xfd   :  { %v578_v39 = vmul.f32 %v1044_v22, %v283_v37  ;;  %v594_v40 = vmul.f32 %v557_v34, %v363_v38 }
  0xfe   :  { %611 = vst [vmem:[%s1154_s3 + $0x78] sm:$0xff] %v579_v35  ;;  %627 = vst [vmem:[%s1154_s3 + $0xf8] sm:$0xff] %v595_v36 }
  0xff   :  { %610 = vst [vmem:[%s1154_s3 + $0x70] sm:$0xff] %v578_v39  ;;  %626 = vst [vmem:[%s1154_s3 + $0xf0] sm:$0xff] %v594_v40 }

// kernel: grace_jaccard_forward.7
= control target key start
LH: loop header
LB: loop body
LE: loop exit
PB: predicated region body
PF: predicated region fallthrough
CT: control target
= control target key end

     0   :  { %v1129_v3 = vmov 0   ;;  %s1615_s1 = inlined_call_operand.vmem [shape: f32[256,128], index: 1, kind: input, shape index: {}]   ;;  %s1616_s0 = inlined_call_operand.vmem [shape: bf16[256,256], index: 0, kind: input, shape index: {}]   ;;  %s1617_s2 = inlined_call_operand.vmem [shape: f32[256,1], index: 2, kind: input, shape index: {}]   ;;  %s1618_s3 = inlined_call_operand.vmem [shape: f32[1,128], index: 3, kind: input, shape index: {}]   ;;  %s1619_s4 = inlined_call_operand.vmem [shape: f32[256,128], index: 4, kind: output, shape index: {}]  }
   0x1   :  { %v134_v0 = vld [vmem:[%s1615_s1 + $0x80] sm:$0xff]  ;;  %v135_v1 = vld [vmem:[%s1615_s1 + $0x88] sm:$0xff]  ;;  %1080 = vset.pattern.permute.xlu1 %v1129_v3  ;;  %1079 = vset.pattern.permute.xlu0 %v1129_v3  ;;  %v136_v6 = vld [vmem:[%s1615_s1 + $0x90] sm:$0xff] }
   0x2   :  { %v118_v2 = vld [vmem:[%s1615_s1] sm:$0xff]  ;;  %v158_v4 = vpack.c.bf16 %v135_v1, %v134_v0  ;;  %v119_v5 = vld [vmem:[%s1615_s1 + $0x8] sm:$0xff]  ;;  %v137_v7 = vld [vmem:[%s1615_s1 + $0x98] sm:$0xff] }
   0x3   :  { %v150_v8 = vpack.c.bf16 %v119_v5, %v118_v2  ;;  %v159_v9 = vpack.c.bf16 %v137_v7, %v136_v6  ;;  %v120_v10 = vld [vmem:[%s1615_s1 + $0x10] sm:$0xff]  ;;  %v121_v11 = vld [vmem:[%s1615_s1 + $0x18] sm:$0xff]  ;;  %v138_v12 = vld [vmem:[%s1615_s1 + $0xa0] sm:$0xff] }
   0x4   :  { %950 = vmatprep.subr.bf16.mxu0 %v158_v4  ;;  %1062 = vmatprep.subr.bf16.mxu1 %v158_v4  ;;  %v139_v13 = vld [vmem:[%s1615_s1 + $0xa8] sm:$0xff]  ;;  %v151_v14 = vpack.c.bf16 %v121_v11, %v120_v10  ;;  %v122_v16 = vld [vmem:[%s1615_s1 + $0x20] sm:$0xff]  ;;  %v140_v18 = vld [vmem:[%s1615_s1 + $0xb0] sm:$0xff] }
   0x5   :  { %951 = vmatpush3.bf16.msra.mxu0 %v150_v8  ;;  %1070 = vmatpush3.bf16.msra.mxu1 %v150_v8  ;;  %v160_v15 = vpack.c.bf16 %v139_v13, %v138_v12  ;;  %v123_v17 = vld [vmem:[%s1615_s1 + $0x28] sm:$0xff]  ;;  %v141_v19 = vld [vmem:[%s1615_s1 + $0xb8] sm:$0xff]  ;;  %v124_v22 = vld [vmem:[%s1615_s1 + $0x30] sm:$0xff] }
   0x6   :  { %952 = vmatprep.subr.bf16.mxu0 %v159_v9  ;;  %1063 = vmatprep.subr.bf16.mxu1 %v159_v9  ;;  %v152_v20 = vpack.c.bf16 %v123_v17, %v122_v16  ;;  %v161_v21 = vpack.c.bf16 %v141_v19, %v140_v18  ;;  %v125_v23 = vld [vmem:[%s1615_s1 + $0x38] sm:$0xff]  ;;  %v142_v24 = vld [vmem:[%s1615_s1 + $0xc0] sm:$0xff]  ;;  %v143_v25 = vld [vmem:[%s1615_s1 + $0xc8] sm:$0xff] }
   0x7   :  { %v126_v26 = vld [vmem:[%s1615_s1 + $0x40] sm:$0xff]  ;;  %v127_v27 = vld [vmem:[%s1615_s1 + $0x48] sm:$0xff]  ;;  %v153_v29 = vpack.c.bf16 %v125_v23, %v124_v22  ;;  %v144_v30 = vld [vmem:[%s1615_s1 + $0xd0] sm:$0xff]  ;;  %v162_v31 = vpack.c.bf16 %v143_v25, %v142_v24 }
   0x8   :  { %v1083_v28 = vld [vmem:[%s1616_s0 + $0x4] ss:$8 sps:$4 sm:$0xff]   ;;  %v145_v33 = vld [vmem:[%s1615_s1 + $0xd8] sm:$0xff]  ;;  %v154_v34 = vpack.c.bf16 %v127_v27, %v126_v26  ;;  %v128_v35 = vld [vmem:[%s1615_s1 + $0x50] sm:$0xff] }
   0x9   :  { %953 = vmatpush3.bf16.msra.mxu0 %v151_v14  ;;  %1071 = vmatpush3.bf16.msra.mxu1 %v151_v14  ;;  %v1086_v32 = vld [vmem:[%s1616_s0 + $0x84] ss:$8 sps:$4 sm:$0xff]   ;;  %v163_v36 = vpack.c.bf16 %v145_v33, %v144_v30  ;;  %v129_v37 = vld [vmem:[%s1615_s1 + $0x58] sm:$0xff]  ;;  %v148_v44 = vld [vmem:[%s1615_s1 + $0xf0] sm:$0xff] }
   0xa   :  { %954 = vmatprep.subr.bf16.mxu0 %v160_v15  ;;  %1064 = vmatprep.subr.bf16.mxu1 %v160_v15  ;;  %v146_v38 = vld [vmem:[%s1615_s1 + $0xe0] sm:$0xff]  ;;  %v147_v39 = vld [vmem:[%s1615_s1 + $0xe8] sm:$0xff]  ;;  %v155_v40 = vpack.c.bf16 %v129_v37, %v128_v35  ;;  %v556_v45 = vld [vmem:[%s1617_s2 + $0x10] sm:$0xff] }
   0xb   :  { %358 = vmatprep.mubr.bf16.mxu0 %v1083_v28  ;;  %422 = vmatprep.mubr.bf16.mxu1 %v1086_v32  ;;  %v130_v41 = vld [vmem:[%s1615_s1 + $0x60] sm:$0xff]  ;;  %v131_v42 = vld [vmem:[%s1615_s1 + $0x68] sm:$0xff]  ;;  %v164_v43 = vpack.c.bf16 %v147_v39, %v146_v38  ;;  %v149_v47 = vld [vmem:[%s1615_s1 + $0xf8] sm:$0xff] }
   0xc   :  { %v554_v46 = vld [vmem:[%s1617_s2] sm:$0xff]  ;;  %630 = vperm.xlu1 %1080, %v556_v45   ;;  %v557_v48 = vld [vmem:[%s1617_s2 + $0x18] sm:$0xff]  ;;  %v555_v49 = vld [vmem:[%s1617_s2 + $0x8] sm:$0xff]  ;;  %v156_v50 = vpack.c.bf16 %v131_v42, %v130_v41  ;;  %v165_v51 = vpack.c.bf16 %v149_v47, %v148_v44 }
   0xd   :  { %955 = vmatpush3.bf16.msra.mxu0 %v152_v20  ;;  %1072 = vmatpush3.bf16.msra.mxu1 %v152_v20  ;;  %v132_v52 = vld [vmem:[%s1615_s1 + $0x70] sm:$0xff]  ;;  %v133_v53 = vld [vmem:[%s1615_s1 + $0x78] sm:$0xff]  ;;  %v559_v54 = vld [vmem:[%s1617_s2 + $0x28] sm:$0xff] }
   0xe   :  { %956 = vmatprep.subr.bf16.mxu0 %v161_v21  ;;  %1065 = vmatprep.subr.bf16.mxu1 %v161_v21  ;;  %v558_v55 = vld [vmem:[%s1617_s2 + $0x20] sm:$0xff]  ;;  %v157_v56 = vpack.c.bf16 %v133_v53, %v132_v52  ;;  %v561_v59 = vld [vmem:[%s1617_s2 + $0x38] sm:$0xff]  ;;  %v560_v60 = vld [vmem:[%s1617_s2 + $0x30] sm:$0xff] }
   0xf   :  { %620 = vperm.xlu0 %1079, %v554_v46   ;;  %v1081_v57 = vld [vmem:[%s1616_s0] ss:$8 sps:$4 sm:$0xff]   ;;  %v1087_v61 = vld [vmem:[%s1616_s0 + $0x14] ss:$8 sps:$4 sm:$0xff]   ;;  %v1091_v1 = vld [vmem:[%s1616_s0 + $0x10] ss:$8 sps:$4 sm:$0xff]  }
  0x10   :  { %635 = vperm.xlu1 %1080, %v557_v48   ;;  %v1084_v58 = vld [vmem:[%s1616_s0 + $0x80] ss:$8 sps:$4 sm:$0xff]   ;;  %v1089_v62 = vld [vmem:[%s1616_s0 + $0x94] ss:$8 sps:$4 sm:$0xff]   ;;  %v1092_v2 = vld [vmem:[%s1616_s0 + $0x90] ss:$8 sps:$4 sm:$0xff]  }
  0x11   :  { %957 = vmatpush3.bf16.msra.mxu0 %v153_v29  ;;  %1073 = vmatpush3.bf16.msra.mxu1 %v153_v29  ;;  %v563_v63 = vld [vmem:[%s1617_s2 + $0x48] sm:$0xff]  ;;  %v562_v0 = vld [vmem:[%s1617_s2 + $0x40] sm:$0xff]  ;;  %v565_v3 = vld [vmem:[%s1617_s2 + $0x58] sm:$0xff] }
  0x12   :  { %958 = vmatprep.subr.bf16.mxu0 %v162_v31  ;;  %1066 = vmatprep.subr.bf16.mxu1 %v162_v31  ;;  %v564_v4 = vld [vmem:[%s1617_s2 + $0x50] sm:$0xff]  ;;  %v1093_v5 = vld [vmem:[%s1616_s0 + $0x24] ss:$8 sps:$4 sm:$0xff]   ;;  %v1097_v9 = vld [vmem:[%s1616_s0 + $0x20] ss:$8 sps:$4 sm:$0xff]  }
  0x13   :  { %625 = vperm.xlu0 %1079, %v555_v49   ;;  %v1095_v6 = vld [vmem:[%s1616_s0 + $0xa4] ss:$8 sps:$4 sm:$0xff]   ;;  %v1098_v10 = vld [vmem:[%s1616_s0 + $0xa0] ss:$8 sps:$4 sm:$0xff]   ;;  %v569_v11 = vld [vmem:[%s1617_s2 + $0x78] sm:$0xff] }
  0x14   :  { %645 = vperm.xlu1 %1080, %v559_v54   ;;  %v567_v7 = vld [vmem:[%s1617_s2 + $0x68] sm:$0xff]  ;;  %v566_v8 = vld [vmem:[%s1617_s2 + $0x60] sm:$0xff]  ;;  %v568_v12 = vld [vmem:[%s1617_s2 + $0x70] sm:$0xff] }
  0x15   :  { %959 = vmatpush3.bf16.msra.mxu0 %v154_v34  ;;  %1074 = vmatpush3.bf16.msra.mxu1 %v154_v34  ;;  %v1099_v13 = vld [vmem:[%s1616_s0 + $0x34] ss:$8 sps:$4 sm:$0xff]   ;;  %v571_v15 = vld [vmem:[%s1617_s2 + $0x88] sm:$0xff]  ;;  %v570_v16 = vld [vmem:[%s1617_s2 + $0x80] sm:$0xff] }
  0x16   :  { %960 = vmatprep.subr.bf16.mxu0 %v163_v36  ;;  %1067 = vmatprep.subr.bf16.mxu1 %v163_v36  ;;  %v1101_v14 = vld [vmem:[%s1616_s0 + $0xb4] ss:$8 sps:$4 sm:$0xff]   ;;  %v1103_v17 = vld [vmem:[%s1616_s0 + $0x30] ss:$8 sps:$4 sm:$0xff]   ;;  %v1105_v21 = vld [vmem:[%s1616_s0 + $0x44] ss:$8 sps:$4 sm:$0xff]  }
  0x17   :  { %640 = vperm.xlu0 %1079, %v558_v55   ;;  %v1104_v18 = vld [vmem:[%s1616_s0 + $0xb0] ss:$8 sps:$4 sm:$0xff]   ;;  %v1107_v22 = vld [vmem:[%s1616_s0 + $0xc4] ss:$8 sps:$4 sm:$0xff]   ;;  %v1109_v25 = vld [vmem:[%s1616_s0 + $0x40] ss:$8 sps:$4 sm:$0xff]  }
  0x18   :  { %655 = vperm.xlu1 %1080, %v561_v59   ;;  %v573_v19 = vld [vmem:[%s1617_s2 + $0x98] sm:$0xff]  ;;  %v572_v20 = vld [vmem:[%s1617_s2 + $0x90] sm:$0xff]  ;;  %v575_v23 = vld [vmem:[%s1617_s2 + $0xa8] sm:$0xff] }
  0x19   :  { %961 = vmatpush3.bf16.msra.mxu0 %v155_v40  ;;  %1075 = vmatpush3.bf16.msra.mxu1 %v155_v40  ;;  %v574_v24 = vld [vmem:[%s1617_s2 + $0xa0] sm:$0xff]  ;;  %v577_v27 = vld [vmem:[%s1617_s2 + $0xb8] sm:$0xff]  ;;  %v576_v28 = vld [vmem:[%s1617_s2 + $0xb0] sm:$0xff] }
  0x1a   :  { %962 = vmatprep.subr.bf16.mxu0 %v164_v43  ;;  %1068 = vmatprep.subr.bf16.mxu1 %v164_v43  ;;  %v1110_v26 = vld [vmem:[%s1616_s0 + $0xc0] ss:$8 sps:$4 sm:$0xff]   ;;  %v1111_v29 = vld [vmem:[%s1616_s0 + $0x54] ss:$8 sps:$4 sm:$0xff]   ;;  %v1115_v33 = vld [vmem:[%s1616_s0 + $0x50] ss:$8 sps:$4 sm:$0xff]  }
  0x1b   :  { %650 = vperm.xlu0 %1079, %v560_v60   ;;  %v1113_v30 = vld [vmem:[%s1616_s0 + $0xd4] ss:$8 sps:$4 sm:$0xff]   ;;  %v579_v31 = vld [vmem:[%s1617_s2 + $0xc8] sm:$0xff]  ;;  %v578_v32 = vld [vmem:[%s1617_s2 + $0xc0] sm:$0xff] }
  0x1c   :  { %665 = vperm.xlu1 %1080, %v563_v63   ;;  %v1116_v34 = vld [vmem:[%s1616_s0 + $0xd0] ss:$8 sps:$4 sm:$0xff]   ;;  %v1117_v37 = vld [vmem:[%s1616_s0 + $0x64] ss:$8 sps:$4 sm:$0xff]   ;;  %v1121_v41 = vld [vmem:[%s1616_s0 + $0x60] ss:$8 sps:$4 sm:$0xff]  }
  0x1d   :  { %963 = vmatpush3.bf16.msra.mxu0 %v156_v50  ;;  %1076 = vmatpush3.bf16.msra.mxu1 %v156_v50  ;;  %v581_v35 = vld [vmem:[%s1617_s2 + $0xd8] sm:$0xff]  ;;  %v580_v36 = vld [vmem:[%s1617_s2 + $0xd0] sm:$0xff]  ;;  %v1119_v38 = vld [vmem:[%s1616_s0 + $0xe4] ss:$8 sps:$4 sm:$0xff]  }
  0x1e   :  { %964 = vmatprep.subr.bf16.mxu0 %v165_v51  ;;  %1069 = vmatprep.subr.bf16.mxu1 %v165_v51  ;;  %v583_v39 = vld [vmem:[%s1617_s2 + $0xe8] sm:$0xff]  ;;  %v582_v40 = vld [vmem:[%s1617_s2 + $0xe0] sm:$0xff]  ;;  %v585_v43 = vld [vmem:[%s1617_s2 + $0xf8] sm:$0xff] }
  0x1f   :  { %660 = vperm.xlu0 %1079, %v562_v0   ;;  %v1122_v42 = vld [vmem:[%s1616_s0 + $0xe0] ss:$8 sps:$4 sm:$0xff]   ;;  %v584_v44 = vld [vmem:[%s1617_s2 + $0xf0] sm:$0xff] }
  0x20   :  { %675 = vperm.xlu1 %1080, %v565_v3   ;;  %v1123_v45 = vld [vmem:[%s1616_s0 + $0x74] ss:$8 sps:$4 sm:$0xff]   ;;  %v1127_v47 = vld [vmem:[%s1616_s0 + $0x70] ss:$8 sps:$4 sm:$0xff]  }
  0x21   :  { %965 = vmatpush3.bf16.msra.mxu0 %v157_v56  ;;  %1077 = vmatpush3.bf16.msra.mxu1 %v157_v56  ;;  %v1125_v46 = vld [vmem:[%s1616_s0 + $0xf4] ss:$8 sps:$4 sm:$0xff]   ;;  %v1128_v48 = vld [vmem:[%s1616_s0 + $0xf0] ss:$8 sps:$4 sm:$0xff]  }
  0x23   :  { %670 = vperm.xlu0 %1079, %v564_v4  }
  0x24   :  { %359 = vmatmul.mubr.bf16.vlgmr.msra.gmra.mrb[0].mxu0 %v1081_v57  ;;  %423 = vmatmul.mubr.bf16.vlgmr.msra.gmra.mrb[0].mxu1 %v1084_v58 }
  0x25   :  { %366 = vmatprep.mubr.bf16.mxu0 %v1087_v61  ;;  %430 = vmatprep.mubr.bf16.mxu1 %v1089_v62 }
  0x26   :  { %685 = vperm.xlu1 %1080, %v567_v7  }
  0x27   :  { %680 = vperm.xlu0 %1079, %v566_v8  }
  0x2a   :  { %695 = vperm.xlu1 %1080, %v569_v11  }
  0x2b   :  { %690 = vperm.xlu0 %1079, %v568_v12  }
  0x2c   :  { %367 = vmatmul.mubr.bf16.gmra.mrb[4].mxu0 %v1091_v1  ;;  %431 = vmatmul.mubr.bf16.gmra.mrb[4].mxu1 %v1092_v2 }
  0x2d   :  { %374 = vmatprep.mubr.bf16.mxu0 %v1093_v5  ;;  %438 = vmatprep.mubr.bf16.mxu1 %v1095_v6 }
  0x2e   :  { %705 = vperm.xlu1 %1080, %v571_v15  }
  0x2f   :  { %700 = vperm.xlu0 %1079, %v570_v16  }
  0x32   :  { %715 = vperm.xlu1 %1080, %v573_v19  }
  0x33   :  { %710 = vperm.xlu0 %1079, %v572_v20  }
  0x34   :  { %375 = vmatmul.mubr.bf16.gmra.mrb[8].mxu0 %v1097_v9  ;;  %439 = vmatmul.mubr.bf16.gmra.mrb[8].mxu1 %v1098_v10  ;;  %v1472_v10 = vld [vmem:[%s1618_s3] ss:$0 sm:$0xff] }
  0x35   :  { %382 = vmatprep.mubr.bf16.mxu0 %v1099_v13  ;;  %446 = vmatprep.mubr.bf16.mxu1 %v1101_v14 }
  0x36   :  { %725 = vperm.xlu1 %1080, %v575_v23  }
  0x37   :  { %720 = vperm.xlu0 %1079, %v574_v24  }
  0x3a   :  { %735 = vperm.xlu1 %1080, %v577_v27  }
  0x3b   :  { %730 = vperm.xlu0 %1079, %v576_v28  }
  0x3c   :  { %383 = vmatmul.mubr.bf16.gmra.mrb[12].mxu0 %v1103_v17  ;;  %447 = vmatmul.mubr.bf16.gmra.mrb[12].mxu1 %v1104_v18 }
  0x3d   :  { %390 = vmatprep.mubr.bf16.mxu0 %v1105_v21  ;;  %454 = vmatprep.mubr.bf16.mxu1 %v1107_v22 }
  0x3e   :  { %745 = vperm.xlu1 %1080, %v579_v31  }
  0x3f   :  { %740 = vperm.xlu0 %1079, %v578_v32  }
  0x42   :  { %755 = vperm.xlu1 %1080, %v581_v35  }
  0x43   :  { %750 = vperm.xlu0 %1079, %v580_v36  }
  0x44   :  { %391 = vmatmul.mubr.bf16.gmra.mrb[16].mxu0 %v1109_v25  ;;  %455 = vmatmul.mubr.bf16.gmra.mrb[16].mxu1 %v1110_v26 }
  0x45   :  { %398 = vmatprep.mubr.bf16.mxu0 %v1111_v29  ;;  %462 = vmatprep.mubr.bf16.mxu1 %v1113_v30 }
  0x46   :  { %765 = vperm.xlu1 %1080, %v583_v39  }
  0x47   :  { %760 = vperm.xlu0 %1079, %v582_v40  }
  0x4a   :  { %775 = vperm.xlu1 %1080, %v585_v43  }
  0x4b   :  { %770 = vperm.xlu0 %1079, %v584_v44  }
  0x4c   :  { %399 = vmatmul.mubr.bf16.gmra.mrb[20].mxu0 %v1115_v33  ;;  %463 = vmatmul.mubr.bf16.gmra.mrb[20].mxu1 %v1116_v34 }
  0x4d   :  { %406 = vmatprep.mubr.bf16.mxu0 %v1117_v37  ;;  %470 = vmatprep.mubr.bf16.mxu1 %v1119_v38 }
  0x54   :  { %407 = vmatmul.mubr.bf16.gmra.mrb[24].mxu0 %v1121_v41  ;;  %471 = vmatmul.mubr.bf16.gmra.mrb[24].mxu1 %v1122_v42 }
  0x55   :  { %414 = vmatprep.mubr.bf16.mxu0 %v1123_v45  ;;  %478 = vmatprep.mubr.bf16.mxu1 %v1125_v46 }
  0x5c   :  { %415 = vmatmul.mubr.bf16.gmra.mrb[28].mxu0 %v1127_v47  ;;  %479 = vmatmul.mubr.bf16.gmra.mrb[28].mxu1 %v1128_v48 }
  0x8b   :  { %v631_v50 = vpop.permute.xlu1 %630 }
  0x8e   :  { %v621_v49 = vpop.permute.xlu0 %620 }
  0x8f   :  { %v1443_v52 = vpop.permute.xlu1 %635 }
  0x92   :  { %v626_v51 = vpop.permute.xlu0 %625 }
  0x93   :  { %v1447_v54 = vpop.permute.xlu1 %645 }
  0x96   :  { %v1445_v53 = vpop.permute.xlu0 %640 }
  0x97   :  { %v1451_v56 = vpop.permute.xlu1 %655 }
  0x9a   :  { %v1449_v55 = vpop.permute.xlu0 %650 }
  0x9b   :  { %v1455_v58 = vpop.permute.xlu1 %665 }
  0x9e   :  { %v1453_v57 = vpop.permute.xlu0 %660 }
  0x9f   :  { %v1459_v60 = vpop.permute.xlu1 %675 }
  0xa2   :  { %v1457_v59 = vpop.permute.xlu0 %670 }
  0xa5   :  { %v1463_v62 = vpop.permute.xlu1 %685 }
  0xa6   :  { %v1461_v61 = vpop.permute.xlu0 %680 }
  0xa9   :  { %v1467_v0 = vpop.permute.xlu1 %695 }
  0xaa   :  { %v1465_v63 = vpop.permute.xlu0 %690 }
  0xad   :  { %v706_v17 = vpop.permute.xlu1 %705 }
  0xae   :  { %v701_v1 = vpop.permute.xlu0 %700 }
  0xb1   :  { %v716_v43 = vpop.permute.xlu1 %715 }
  0xb2   :  { %v711_v22 = vpop.permute.xlu0 %710 }
  0xb6   :  { %v721_v48 = vpop.permute.xlu0 %720 }
  0xf7   :  { %v966_v2 = vpop.f32.mrb[0].mxu0  ;;  %v1014_v3 = vpop.f32.mrb[0].mxu1 }
  0xf8   :  { %v967_v4 = vpop.f32.mrb[1].mxu0  ;;  %v1015_v5 = vpop.f32.mrb[1].mxu1 }
  0xf9   :  { %v968_v6 = vadd.f32 %v967_v4, %v966_v2  ;;  %v1016_v7 = vadd.f32 %v1015_v5, %v1014_v3  ;;  %v969_v8 = vpop.f32.mrb[2].mxu0  ;;  %v1017_v9 = vpop.f32.mrb[2].mxu1 }
  0xfa   :  { %v970_v11 = vpop.f32.mrb[3].mxu0  ;;  %v1018_v12 = vpop.f32.mrb[3].mxu1 }
  0xfb   :  { %v778_v13 = vmul.f32 %v968_v6, %v621_v49  ;;  %v794_v14 = vmul.f32 %v1016_v7, %v701_v1  ;;  %v971_v15 = vadd.f32 %v970_v11, %v969_v8  ;;  %v1019_v16 = vadd.f32 %v1018_v12, %v1017_v9 }
  0xfd   :  { %v817_v18 = vadd.f32 %v1472_v10, %v778_v13  ;;  %v833_v19 = vadd.f32 %v1472_v10, %v794_v14  ;;  %v779_v20 = vmul.f32 %v971_v15, %v626_v51  ;;  %v795_v21 = vmul.f32 %v1019_v16, %v706_v17 }
  0xff   :  { %v849_v23 = vmax.f32 %v817_v18, 0.0  ;;  %v865_v24 = vmax.f32 %v833_v19, 0.0  ;;  %v818_v25 = vadd.f32 %v1472_v10, %v779_v20  ;;  %v834_v26 = vadd.f32 %v1472_v10, %v795_v21  ;;  %v972_v27 = vpop.f32.mrb[4].mxu0  ;;  %v1020_v28 = vpop.f32.mrb[4].mxu1 }
 0x100   :  { %v973_v29 = vpop.f32.mrb[5].mxu0  ;;  %v1021_v30 = vpop.f32.mrb[5].mxu1 }
 0x101   :  { %881 = vst [vmem:[%s1619_s4] sm:$0xff] %v849_v23  ;;  %897 = vst [vmem:[%s1619_s4 + $0x80] sm:$0xff] %v865_v24  ;;  %v850_v31 = vmax.f32 %v818_v25, 0.0  ;;  %v866_v32 = vmax.f32 %v834_v26, 0.0  ;;  %v974_v33 = vadd.f32 %v973_v29, %v972_v27  ;;  %v1022_v34 = vadd.f32 %v1021_v30, %v1020_v28  ;;  %v975_v35 = vpop.f32.mrb[6].mxu0  ;;  %v1023_v36 = vpop.f32.mrb[6].mxu1 }
 0x102   :  { %v976_v37 = vpop.f32.mrb[7].mxu0  ;;  %v1024_v38 = vpop.f32.mrb[7].mxu1 }
 0x103   :  { %882 = vst [vmem:[%s1619_s4 + $0x8] sm:$0xff] %v850_v31  ;;  %898 = vst [vmem:[%s1619_s4 + $0x88] sm:$0xff] %v866_v32  ;;  %v780_v39 = vmul.f32 %v974_v33, %v631_v50  ;;  %v796_v40 = vmul.f32 %v1022_v34, %v711_v22  ;;  %v977_v41 = vadd.f32 %v976_v37, %v975_v35  ;;  %v726_v18 = vpop.permute.xlu1 %725  ;;  %v731_v23 = vpop.permute.xlu0 %730 }
 0x104   :  { %v1025_v42 = vadd.f32 %v1024_v38, %v1023_v36 }
 0x105   :  { %v819_v44 = vadd.f32 %v1472_v10, %v780_v39  ;;  %v835_v45 = vadd.f32 %v1472_v10, %v796_v40  ;;  %v781_v46 = vmul.f32 %v977_v41, %v1443_v52 }
 0x106   :  { %v797_v47 = vmul.f32 %v1025_v42, %v716_v43 }
 0x107   :  { %v851_v49 = vmax.f32 %v819_v44, 0.0  ;;  %v867_v51 = vmax.f32 %v835_v45, 0.0  ;;  %v820_v1 = vadd.f32 %v1472_v10, %v781_v46  ;;  %v978_v3 = vpop.f32.mrb[8].mxu0  ;;  %v1026_v50 = vpop.f32.mrb[8].mxu1 }
 0x108   :  { %v836_v2 = vadd.f32 %v1472_v10, %v797_v47  ;;  %v979_v4 = vpop.f32.mrb[9].mxu0  ;;  %v1027_v5 = vpop.f32.mrb[9].mxu1 }
 0x109   :  { %883 = vst [vmem:[%s1619_s4 + $0x10] sm:$0xff] %v851_v49  ;;  %899 = vst [vmem:[%s1619_s4 + $0x90] sm:$0xff] %v867_v51  ;;  %v852_v52 = vmax.f32 %v820_v1, 0.0  ;;  %v980_v7 = vadd.f32 %v979_v4, %v978_v3  ;;  %v1028_v8 = vadd.f32 %v1027_v5, %v1026_v50  ;;  %v981_v9 = vpop.f32.mrb[10].mxu0  ;;  %v1029_v11 = vpop.f32.mrb[10].mxu1 }
 0x10a   :  { %v868_v6 = vmax.f32 %v836_v2, 0.0  ;;  %v982_v12 = vpop.f32.mrb[11].mxu0  ;;  %v1030_v13 = vpop.f32.mrb[11].mxu1 }
 0x10b   :  { %884 = vst [vmem:[%s1619_s4 + $0x18] sm:$0xff] %v852_v52  ;;  %v782_v14 = vmul.f32 %v980_v7, %v1445_v53  ;;  %v798_v15 = vmul.f32 %v1028_v8, %v721_v48  ;;  %v983_v16 = vadd.f32 %v982_v12, %v981_v9  ;;  %v1031_v17 = vadd.f32 %v1030_v13, %v1029_v11  ;;  %v736_v42 = vpop.permute.xlu1 %735  ;;  %v741_v47 = vpop.permute.xlu0 %740 }
 0x10c   :  { %900 = vst [vmem:[%s1619_s4 + $0x98] sm:$0xff] %v868_v6 }
 0x10d   :  { %v821_v19 = vadd.f32 %v1472_v10, %v782_v14  ;;  %v837_v20 = vadd.f32 %v1472_v10, %v798_v15  ;;  %v783_v21 = vmul.f32 %v983_v16, %v1447_v54  ;;  %v799_v22 = vmul.f32 %v1031_v17, %v726_v18 }
 0x10f   :  { %v853_v24 = vmax.f32 %v821_v19, 0.0  ;;  %v869_v25 = vmax.f32 %v837_v20, 0.0  ;;  %v822_v26 = vadd.f32 %v1472_v10, %v783_v21  ;;  %v838_v27 = vadd.f32 %v1472_v10, %v799_v22  ;;  %v984_v28 = vpop.f32.mrb[12].mxu0  ;;  %v1032_v53 = vpop.f32.mrb[12].mxu1 }
 0x110   :  { %v985_v29 = vpop.f32.mrb[13].mxu0  ;;  %v1033_v30 = vpop.f32.mrb[13].mxu1 }
 0x111   :  { %885 = vst [vmem:[%s1619_s4 + $0x20] sm:$0xff] %v853_v24  ;;  %901 = vst [vmem:[%s1619_s4 + $0xa0] sm:$0xff] %v869_v25  ;;  %v854_v54 = vmax.f32 %v822_v26, 0.0  ;;  %v870_v31 = vmax.f32 %v838_v27, 0.0  ;;  %v986_v32 = vadd.f32 %v985_v29, %v984_v28  ;;  %v1034_v33 = vadd.f32 %v1033_v30, %v1032_v53  ;;  %v987_v34 = vpop.f32.mrb[14].mxu0  ;;  %v1035_v35 = vpop.f32.mrb[14].mxu1 }
 0x112   :  { %v988_v36 = vpop.f32.mrb[15].mxu0  ;;  %v1036_v37 = vpop.f32.mrb[15].mxu1 }
 0x113   :  { %886 = vst [vmem:[%s1619_s4 + $0x28] sm:$0xff] %v854_v54  ;;  %902 = vst [vmem:[%s1619_s4 + $0xa8] sm:$0xff] %v870_v31  ;;  %v784_v38 = vmul.f32 %v986_v32, %v1449_v55  ;;  %v800_v39 = vmul.f32 %v1034_v33, %v731_v23  ;;  %v989_v40 = vadd.f32 %v988_v36, %v987_v34  ;;  %v746_v15 = vpop.permute.xlu1 %745  ;;  %v751_v20 = vpop.permute.xlu0 %750 }
 0x114   :  { %v1037_v41 = vadd.f32 %v1036_v37, %v1035_v35 }
 0x115   :  { %v823_v43 = vadd.f32 %v1472_v10, %v784_v38  ;;  %v839_v44 = vadd.f32 %v1472_v10, %v800_v39  ;;  %v785_v45 = vmul.f32 %v989_v40, %v1451_v56 }
 0x116   :  { %v801_v46 = vmul.f32 %v1037_v41, %v736_v42 }
 0x117   :  { %v855_v48 = vmax.f32 %v823_v43, 0.0  ;;  %v871_v49 = vmax.f32 %v839_v44, 0.0  ;;  %v824_v51 = vadd.f32 %v1472_v10, %v785_v45  ;;  %v990_v2 = vpop.f32.mrb[16].mxu0  ;;  %v1038_v55 = vpop.f32.mrb[16].mxu1 }
 0x118   :  { %v840_v1 = vadd.f32 %v1472_v10, %v801_v46  ;;  %v991_v3 = vpop.f32.mrb[17].mxu0  ;;  %v1039_v50 = vpop.f32.mrb[17].mxu1 }
 0x119   :  { %887 = vst [vmem:[%s1619_s4 + $0x30] sm:$0xff] %v855_v48  ;;  %903 = vst [vmem:[%s1619_s4 + $0xb0] sm:$0xff] %v871_v49  ;;  %v856_v56 = vmax.f32 %v824_v51, 0.0  ;;  %v992_v5 = vadd.f32 %v991_v3, %v990_v2  ;;  %v1040_v52 = vadd.f32 %v1039_v50, %v1038_v55  ;;  %v993_v6 = vpop.f32.mrb[18].mxu0  ;;  %v1041_v7 = vpop.f32.mrb[18].mxu1 }
 0x11a   :  { %v872_v4 = vmax.f32 %v840_v1, 0.0  ;;  %v994_v8 = vpop.f32.mrb[19].mxu0  ;;  %v1042_v9 = vpop.f32.mrb[19].mxu1 }
 0x11b   :  { %888 = vst [vmem:[%s1619_s4 + $0x38] sm:$0xff] %v856_v56  ;;  %v786_v11 = vmul.f32 %v992_v5, %v1453_v57  ;;  %v802_v12 = vmul.f32 %v1040_v52, %v741_v47  ;;  %v995_v13 = vadd.f32 %v994_v8, %v993_v6  ;;  %v1043_v14 = vadd.f32 %v1042_v9, %v1041_v7  ;;  %v756_v37 = vpop.permute.xlu1 %755  ;;  %v761_v42 = vpop.permute.xlu0 %760 }
 0x11c   :  { %904 = vst [vmem:[%s1619_s4 + $0xb8] sm:$0xff] %v872_v4 }
 0x11d   :  { %v825_v16 = vadd.f32 %v1472_v10, %v786_v11  ;;  %v841_v17 = vadd.f32 %v1472_v10, %v802_v12  ;;  %v787_v18 = vmul.f32 %v995_v13, %v1455_v58  ;;  %v803_v19 = vmul.f32 %v1043_v14, %v746_v15 }
 0x11f   :  { %v857_v21 = vmax.f32 %v825_v16, 0.0  ;;  %v873_v22 = vmax.f32 %v841_v17, 0.0  ;;  %v826_v23 = vadd.f32 %v1472_v10, %v787_v18  ;;  %v842_v24 = vadd.f32 %v1472_v10, %v803_v19  ;;  %v996_v25 = vpop.f32.mrb[20].mxu0  ;;  %v1044_v57 = vpop.f32.mrb[20].mxu1 }
 0x120   :  { %v997_v26 = vpop.f32.mrb[21].mxu0  ;;  %v1045_v27 = vpop.f32.mrb[21].mxu1 }
 0x121   :  { %889 = vst [vmem:[%s1619_s4 + $0x40] sm:$0xff] %v857_v21  ;;  %905 = vst [vmem:[%s1619_s4 + $0xc0] sm:$0xff] %v873_v22  ;;  %v858_v58 = vmax.f32 %v826_v23, 0.0  ;;  %v874_v28 = vmax.f32 %v842_v24, 0.0  ;;  %v998_v53 = vadd.f32 %v997_v26, %v996_v25  ;;  %v1046_v29 = vadd.f32 %v1045_v27, %v1044_v57  ;;  %v999_v30 = vpop.f32.mrb[22].mxu0  ;;  %v1047_v54 = vpop.f32.mrb[22].mxu1 }
 0x122   :  { %v1000_v31 = vpop.f32.mrb[23].mxu0  ;;  %v1048_v32 = vpop.f32.mrb[23].mxu1 }
 0x123   :  { %890 = vst [vmem:[%s1619_s4 + $0x48] sm:$0xff] %v858_v58  ;;  %906 = vst [vmem:[%s1619_s4 + $0xc8] sm:$0xff] %v874_v28  ;;  %v788_v33 = vmul.f32 %v998_v53, %v1457_v59  ;;  %v804_v34 = vmul.f32 %v1046_v29, %v751_v20  ;;  %v1001_v35 = vadd.f32 %v1000_v31, %v999_v30  ;;  %v766_v7 = vpop.permute.xlu1 %765  ;;  %v771_v13 = vpop.permute.xlu0 %770 }
 0x124   :  { %v1049_v36 = vadd.f32 %v1048_v32, %v1047_v54 }
 0x125   :  { %v827_v38 = vadd.f32 %v1472_v10, %v788_v33  ;;  %v843_v39 = vadd.f32 %v1472_v10, %v804_v34  ;;  %v789_v40 = vmul.f32 %v1001_v35, %v1459_v60 }
 0x126   :  { %v805_v41 = vmul.f32 %v1049_v36, %v756_v37 }
 0x127   :  { %v859_v43 = vmax.f32 %v827_v38, 0.0  ;;  %v875_v44 = vmax.f32 %v843_v39, 0.0  ;;  %v828_v45 = vadd.f32 %v1472_v10, %v789_v40  ;;  %v1002_v47 = vpop.f32.mrb[24].mxu0  ;;  %v1050_v59 = vpop.f32.mrb[24].mxu1 }
 0x128   :  { %v844_v46 = vadd.f32 %v1472_v10, %v805_v41  ;;  %v1003_v48 = vpop.f32.mrb[25].mxu0  ;;  %v1051_v49 = vpop.f32.mrb[25].mxu1 }
 0x129   :  { %891 = vst [vmem:[%s1619_s4 + $0x50] sm:$0xff] %v859_v43  ;;  %907 = vst [vmem:[%s1619_s4 + $0xd0] sm:$0xff] %v875_v44  ;;  %v860_v60 = vmax.f32 %v828_v45, 0.0  ;;  %v1004_v1 = vadd.f32 %v1003_v48, %v1002_v47  ;;  %v1052_v2 = vadd.f32 %v1051_v49, %v1050_v59  ;;  %v1005_v55 = vpop.f32.mrb[26].mxu0  ;;  %v1053_v3 = vpop.f32.mrb[26].mxu1 }
 0x12a   :  { %v876_v51 = vmax.f32 %v844_v46, 0.0  ;;  %v1006_v50 = vpop.f32.mrb[27].mxu0  ;;  %v1054_v56 = vpop.f32.mrb[27].mxu1 }
 0x12b   :  { %892 = vst [vmem:[%s1619_s4 + $0x58] sm:$0xff] %v860_v60  ;;  %v790_v4 = vmul.f32 %v1004_v1, %v1461_v61  ;;  %v806_v5 = vmul.f32 %v1052_v2, %v761_v42  ;;  %v1007_v52 = vadd.f32 %v1006_v50, %v1005_v55  ;;  %v1055_v6 = vadd.f32 %v1054_v56, %v1053_v3  ;;  %v776_v29 = vpop.permute.xlu1 %775 }
 0x12c   :  { %908 = vst [vmem:[%s1619_s4 + $0xd8] sm:$0xff] %v876_v51 }
 0x12d   :  { %v829_v8 = vadd.f32 %v1472_v10, %v790_v4  ;;  %v845_v9 = vadd.f32 %v1472_v10, %v806_v5  ;;  %v791_v11 = vmul.f32 %v1007_v52, %v1463_v62  ;;  %v807_v12 = vmul.f32 %v1055_v6, %v766_v7 }
 0x12f   :  { %v861_v14 = vmax.f32 %v829_v8, 0.0  ;;  %v877_v15 = vmax.f32 %v845_v9, 0.0  ;;  %v830_v16 = vadd.f32 %v1472_v10, %v791_v11  ;;  %v846_v17 = vadd.f32 %v1472_v10, %v807_v12  ;;  %v1008_v18 = vpop.f32.mrb[28].mxu0  ;;  %v1056_v61 = vpop.f32.mrb[28].mxu1 }
 0x130   :  { %v1009_v19 = vpop.f32.mrb[29].mxu0  ;;  %v1057_v20 = vpop.f32.mrb[29].mxu1 }
 0x131   :  { %893 = vst [vmem:[%s1619_s4 + $0x60] sm:$0xff] %v861_v14  ;;  %909 = vst [vmem:[%s1619_s4 + $0xe0] sm:$0xff] %v877_v15  ;;  %v862_v62 = vmax.f32 %v830_v16, 0.0  ;;  %v878_v21 = vmax.f32 %v846_v17, 0.0  ;;  %v1010_v22 = vadd.f32 %v1009_v19, %v1008_v18  ;;  %v1058_v23 = vadd.f32 %v1057_v20, %v1056_v61  ;;  %v1011_v24 = vpop.f32.mrb[30].mxu0  ;;  %v1059_v25 = vpop.f32.mrb[30].mxu1 }
 0x132   :  { %v1012_v57 = vpop.f32.mrb[31].mxu0  ;;  %v1060_v26 = vpop.f32.mrb[31].mxu1 }
 0x133   :  { %894 = vst [vmem:[%s1619_s4 + $0x68] sm:$0xff] %v862_v62  ;;  %910 = vst [vmem:[%s1619_s4 + $0xe8] sm:$0xff] %v878_v21  ;;  %v792_v27 = vmul.f32 %v1010_v22, %v1465_v63  ;;  %v808_v58 = vmul.f32 %v1058_v23, %v771_v13  ;;  %v1013_v28 = vadd.f32 %v1012_v57, %v1011_v24 }
 0x134   :  { %v1061_v53 = vadd.f32 %v1060_v26, %v1059_v25 }
 0x135   :  { %v831_v30 = vadd.f32 %v1472_v10, %v792_v27  ;;  %v847_v54 = vadd.f32 %v1472_v10, %v808_v58  ;;  %v793_v31 = vmul.f32 %v1013_v28, %v1467_v0 }
 0x136   :  { %v809_v32 = vmul.f32 %v1061_v53, %v776_v29 }
 0x137   :  { %v863_v33 = vmax.f32 %v831_v30, 0.0  ;;  %v879_v34 = vmax.f32 %v847_v54, 0.0  ;;  %v832_v35 = vadd.f32 %v1472_v10, %v793_v31 }
 0x138   :  { %v848_v36 = vadd.f32 %v1472_v10, %v809_v32 }
 0x139   :  { %895 = vst [vmem:[%s1619_s4 + $0x70] sm:$0xff] %v863_v33  ;;  %911 = vst [vmem:[%s1619_s4 + $0xf0] sm:$0xff] %v879_v34  ;;  %v864_v63 = vmax.f32 %v832_v35, 0.0 }
 0x13a   :  { %v880_v37 = vmax.f32 %v848_v36, 0.0 }
 0x13b   :  { %896 = vst [vmem:[%s1619_s4 + $0x78] sm:$0xff] %v864_v63 }
 0x13c   :  { %912 = vst [vmem:[%s1619_s4 + $0xf8] sm:$0xff] %v880_v37 }

// kernel: grace_jaccard_forward.8
= control target key start
LH: loop header
LB: loop body
LE: loop exit
PB: predicated region body
PF: predicated region fallthrough
CT: control target
= control target key end

     0   :  { %v726_v3 = vmov 0   ;;  %s1110_s1 = inlined_call_operand.vmem [shape: f32[128,128], index: 1, kind: input, shape index: {}]   ;;  %s1111_s2 = inlined_call_operand.vmem [shape: f32[256,1], index: 2, kind: input, shape index: {}]   ;;  %s1112_s0 = inlined_call_operand.vmem [shape: f32[256,128], index: 0, kind: input, shape index: {}]   ;;  %s1113_s3 = inlined_call_operand.vmem [shape: f32[256,128], index: 3, kind: output, shape index: {}]  }
   0x1   :  { %v46_v0 = vld [vmem:[%s1110_s1] sm:$0xff]  ;;  %v47_v1 = vld [vmem:[%s1110_s1 + $0x8] sm:$0xff]  ;;  %v48_v2 = vld [vmem:[%s1110_s1 + $0x10] sm:$0xff]  ;;  %725 = vset.pattern.permute.xlu1 %v726_v3  ;;  %724 = vset.pattern.permute.xlu0 %v726_v3 }
   0x2   :  { %v675_v4 = vpack.c.bf16 %v47_v1, %v46_v0  ;;  %v49_v5 = vld [vmem:[%s1110_s1 + $0x18] sm:$0xff]  ;;  %v50_v7 = vld [vmem:[%s1110_s1 + $0x20] sm:$0xff]  ;;  %v51_v8 = vld [vmem:[%s1110_s1 + $0x28] sm:$0xff] }
   0x3   :  { %v679_v6 = vpack.c.bf16 %v49_v5, %v48_v2  ;;  %v289_v9 = vld [vmem:[%s1111_s2 + $0x10] sm:$0xff]  ;;  %v683_v10 = vpack.c.bf16 %v51_v8, %v50_v7  ;;  %v287_v11 = vld [vmem:[%s1111_s2] sm:$0xff]  ;;  %v53_v13 = vld [vmem:[%s1110_s1 + $0x38] sm:$0xff] }
   0x4   :  { %676 = vmatprep.subr.bf16.mxu0 %v675_v4  ;;  %707 = vmatprep.subr.bf16.mxu1 %v675_v4  ;;  %v52_v12 = vld [vmem:[%s1110_s1 + $0x30] sm:$0xff]  ;;  %v14_v14 = vld [vmem:[%s1112_s0] sm:$0xff]  ;;  %v290_v15 = vld [vmem:[%s1111_s2 + $0x18] sm:$0xff] }
   0x5   :  { %678 = vmatpush3.bf16.msra.mxu0 %v675_v4  ;;  %715 = vmatpush3.bf16.msra.mxu1 %v675_v4  ;;  %v288_v16 = vld [vmem:[%s1111_s2 + $0x8] sm:$0xff]  ;;  %v30_v17 = vld [vmem:[%s1112_s0 + $0x80] sm:$0xff]  ;;  %v687_v18 = vpack.c.bf16 %v53_v13, %v52_v12  ;;  %v56_v24 = vld [vmem:[%s1110_s1 + $0x50] sm:$0xff] }
   0x6   :  { %680 = vmatprep.subr.bf16.mxu0 %v679_v6  ;;  %708 = vmatprep.subr.bf16.mxu1 %v679_v6  ;;  %v54_v19 = vld [vmem:[%s1110_s1 + $0x40] sm:$0xff]  ;;  %v55_v20 = vld [vmem:[%s1110_s1 + $0x48] sm:$0xff]  ;;  %v57_v25 = vld [vmem:[%s1110_s1 + $0x58] sm:$0xff] }
   0x7   :  { %331 = vperm.xlu1 %725, %v289_v9   ;;  %321 = vperm.xlu0 %724, %v287_v11   ;;  %v292_v21 = vld [vmem:[%s1111_s2 + $0x28] sm:$0xff]  ;;  %v291_v22 = vld [vmem:[%s1111_s2 + $0x20] sm:$0xff]  ;;  %v691_v23 = vpack.c.bf16 %v55_v20, %v54_v19  ;;  %v294_v26 = vld [vmem:[%s1111_s2 + $0x38] sm:$0xff]  ;;  %v695_v28 = vpack.c.bf16 %v57_v25, %v56_v24 }
   0x8   :  { %627 = vmatprep.mubr.f32.mxu0 %v14_v14  ;;  %651 = vmatprep.mubr.f32.mxu1 %v30_v17  ;;  %v293_v27 = vld [vmem:[%s1111_s2 + $0x30] sm:$0xff]  ;;  %v58_v29 = vld [vmem:[%s1110_s1 + $0x60] sm:$0xff]  ;;  %v59_v30 = vld [vmem:[%s1110_s1 + $0x68] sm:$0xff] }
   0x9   :  { %682 = vmatpush3.bf16.msra.mxu0 %v679_v6  ;;  %716 = vmatpush3.bf16.msra.mxu1 %v679_v6  ;;  %v296_v31 = vld [vmem:[%s1111_s2 + $0x48] sm:$0xff]  ;;  %v295_v32 = vld [vmem:[%s1111_s2 + $0x40] sm:$0xff]  ;;  %v699_v33 = vpack.c.bf16 %v59_v30, %v58_v29  ;;  %v60_v34 = vld [vmem:[%s1110_s1 + $0x70] sm:$0xff] }
   0xa   :  { %684 = vmatprep.subr.bf16.mxu0 %v683_v10  ;;  %709 = vmatprep.subr.bf16.mxu1 %v683_v10  ;;  %v61_v35 = vld [vmem:[%s1110_s1 + $0x78] sm:$0xff]  ;;  %v297_v37 = vld [vmem:[%s1111_s2 + $0x50] sm:$0xff]  ;;  %v300_v39 = vld [vmem:[%s1111_s2 + $0x68] sm:$0xff] }
   0xb   :  { %336 = vperm.xlu1 %725, %v290_v15   ;;  %326 = vperm.xlu0 %724, %v288_v16   ;;  %v298_v36 = vld [vmem:[%s1111_s2 + $0x58] sm:$0xff]  ;;  %v703_v38 = vpack.c.bf16 %v61_v35, %v60_v34  ;;  %v299_v40 = vld [vmem:[%s1111_s2 + $0x60] sm:$0xff]  ;;  %v301_v42 = vld [vmem:[%s1111_s2 + $0x70] sm:$0xff] }
   0xc   :  { %v302_v41 = vld [vmem:[%s1111_s2 + $0x78] sm:$0xff]  ;;  %v15_v43 = vld [vmem:[%s1112_s0 + $0x8] sm:$0xff]  ;;  %v16_v45 = vld [vmem:[%s1112_s0 + $0x10] sm:$0xff] }
   0xd   :  { %686 = vmatpush3.bf16.msra.mxu0 %v683_v10  ;;  %717 = vmatpush3.bf16.msra.mxu1 %v683_v10  ;;  %v31_v44 = vld [vmem:[%s1112_s0 + $0x88] sm:$0xff]  ;;  %v32_v46 = vld [vmem:[%s1112_s0 + $0x90] sm:$0xff]  ;;  %v303_v48 = vld [vmem:[%s1111_s2 + $0x80] sm:$0xff] }
   0xe   :  { %688 = vmatprep.subr.bf16.mxu0 %v687_v18  ;;  %710 = vmatprep.subr.bf16.mxu1 %v687_v18  ;;  %v304_v47 = vld [vmem:[%s1111_s2 + $0x88] sm:$0xff]  ;;  %v17_v49 = vld [vmem:[%s1112_s0 + $0x18] sm:$0xff]  ;;  %v18_v51 = vld [vmem:[%s1112_s0 + $0x20] sm:$0xff] }
   0xf   :  { %346 = vperm.xlu1 %725, %v292_v21   ;;  %341 = vperm.xlu0 %724, %v291_v22   ;;  %v33_v50 = vld [vmem:[%s1112_s0 + $0x98] sm:$0xff]  ;;  %v34_v52 = vld [vmem:[%s1112_s0 + $0xa0] sm:$0xff]  ;;  %v305_v54 = vld [vmem:[%s1111_s2 + $0x90] sm:$0xff] }
  0x10   :  { %v306_v53 = vld [vmem:[%s1111_s2 + $0x98] sm:$0xff]  ;;  %v19_v55 = vld [vmem:[%s1112_s0 + $0x28] sm:$0xff]  ;;  %v20_v57 = vld [vmem:[%s1112_s0 + $0x30] sm:$0xff] }
  0x11   :  { %690 = vmatpush3.bf16.msra.mxu0 %v687_v18  ;;  %718 = vmatpush3.bf16.msra.mxu1 %v687_v18  ;;  %v35_v56 = vld [vmem:[%s1112_s0 + $0xa8] sm:$0xff]  ;;  %v36_v58 = vld [vmem:[%s1112_s0 + $0xb0] sm:$0xff]  ;;  %v307_v60 = vld [vmem:[%s1111_s2 + $0xa0] sm:$0xff] }
  0x12   :  { %692 = vmatprep.subr.bf16.mxu0 %v691_v23  ;;  %711 = vmatprep.subr.bf16.mxu1 %v691_v23  ;;  %v308_v59 = vld [vmem:[%s1111_s2 + $0xa8] sm:$0xff]  ;;  %v21_v61 = vld [vmem:[%s1112_s0 + $0x38] sm:$0xff]  ;;  %v22_v63 = vld [vmem:[%s1112_s0 + $0x40] sm:$0xff] }
  0x13   :  { %356 = vperm.xlu1 %725, %v294_v26   ;;  %351 = vperm.xlu0 %724, %v293_v27   ;;  %v37_v62 = vld [vmem:[%s1112_s0 + $0xb8] sm:$0xff]  ;;  %v38_v0 = vld [vmem:[%s1112_s0 + $0xc0] sm:$0xff]  ;;  %v309_v2 = vld [vmem:[%s1111_s2 + $0xb0] sm:$0xff] }
  0x14   :  { %v310_v1 = vld [vmem:[%s1111_s2 + $0xb8] sm:$0xff]  ;;  %v23_v3 = vld [vmem:[%s1112_s0 + $0x48] sm:$0xff]  ;;  %v24_v5 = vld [vmem:[%s1112_s0 + $0x50] sm:$0xff] }
  0x15   :  { %694 = vmatpush3.bf16.msra.mxu0 %v691_v23  ;;  %719 = vmatpush3.bf16.msra.mxu1 %v691_v23  ;;  %v39_v4 = vld [vmem:[%s1112_s0 + $0xc8] sm:$0xff]  ;;  %v40_v6 = vld [vmem:[%s1112_s0 + $0xd0] sm:$0xff]  ;;  %v311_v8 = vld [vmem:[%s1111_s2 + $0xc0] sm:$0xff] }
  0x16   :  { %696 = vmatprep.subr.bf16.mxu0 %v695_v28  ;;  %712 = vmatprep.subr.bf16.mxu1 %v695_v28  ;;  %v312_v7 = vld [vmem:[%s1111_s2 + $0xc8] sm:$0xff]  ;;  %v25_v9 = vld [vmem:[%s1112_s0 + $0x58] sm:$0xff]  ;;  %v26_v11 = vld [vmem:[%s1112_s0 + $0x60] sm:$0xff] }
  0x17   :  { %366 = vperm.xlu1 %725, %v296_v31   ;;  %361 = vperm.xlu0 %724, %v295_v32   ;;  %v41_v10 = vld [vmem:[%s1112_s0 + $0xd8] sm:$0xff]  ;;  %v42_v12 = vld [vmem:[%s1112_s0 + $0xe0] sm:$0xff]  ;;  %v313_v14 = vld [vmem:[%s1111_s2 + $0xd0] sm:$0xff] }
  0x18   :  { %v314_v13 = vld [vmem:[%s1111_s2 + $0xd8] sm:$0xff]  ;;  %v27_v15 = vld [vmem:[%s1112_s0 + $0x68] sm:$0xff]  ;;  %v28_v17 = vld [vmem:[%s1112_s0 + $0x70] sm:$0xff] }
  0x19   :  { %698 = vmatpush3.bf16.msra.mxu0 %v695_v28  ;;  %720 = vmatpush3.bf16.msra.mxu1 %v695_v28  ;;  %v43_v16 = vld [vmem:[%s1112_s0 + $0xe8] sm:$0xff]  ;;  %v44_v18 = vld [vmem:[%s1112_s0 + $0xf0] sm:$0xff]  ;;  %v315_v20 = vld [vmem:[%s1111_s2 + $0xe0] sm:$0xff] }
  0x1a   :  { %700 = vmatprep.subr.bf16.mxu0 %v699_v33  ;;  %713 = vmatprep.subr.bf16.mxu1 %v699_v33  ;;  %v316_v19 = vld [vmem:[%s1111_s2 + $0xe8] sm:$0xff]  ;;  %v29_v21 = vld [vmem:[%s1112_s0 + $0x78] sm:$0xff]  ;;  %v317_v24 = vld [vmem:[%s1111_s2 + $0xf0] sm:$0xff] }
  0x1b   :  { %376 = vperm.xlu1 %725, %v298_v36   ;;  %371 = vperm.xlu0 %724, %v297_v37   ;;  %v45_v22 = vld [vmem:[%s1112_s0 + $0xf8] sm:$0xff] }
  0x1c   :  { %v318_v23 = vld [vmem:[%s1111_s2 + $0xf8] sm:$0xff] }
  0x1d   :  { %702 = vmatpush3.bf16.msra.mxu0 %v699_v33  ;;  %721 = vmatpush3.bf16.msra.mxu1 %v699_v33 }
  0x1e   :  { %704 = vmatprep.subr.bf16.mxu0 %v703_v38  ;;  %714 = vmatprep.subr.bf16.mxu1 %v703_v38 }
  0x1f   :  { %386 = vperm.xlu1 %725, %v300_v39   ;;  %381 = vperm.xlu0 %724, %v299_v40  }
  0x21   :  { %706 = vmatpush3.bf16.msra.mxu0 %v703_v38  ;;  %722 = vmatpush3.bf16.msra.mxu1 %v703_v38 }
  0x23   :  { %396 = vperm.xlu1 %725, %v302_v41   ;;  %391 = vperm.xlu0 %724, %v301_v42  }
  0x24   :  { %628 = vmatmul.mubr.f32.vlgmr.msra.gmra.mrb[0].mxu0 %v15_v43  ;;  %652 = vmatmul.mubr.f32.vlgmr.msra.gmra.mrb[0].mxu1 %v31_v44 }
  0x25   :  { %630 = vmatprep.mubr.f32.mxu0 %v16_v45  ;;  %654 = vmatprep.mubr.f32.mxu1 %v32_v46 }
  0x27   :  { %406 = vperm.xlu1 %725, %v304_v47   ;;  %401 = vperm.xlu0 %724, %v303_v48  }
  0x28   :  { %631 = vmatmul.mubr.f32.gmra.mrb[2].mxu0 %v17_v49  ;;  %655 = vmatmul.mubr.f32.gmra.mrb[2].mxu1 %v33_v50 }
  0x29   :  { %633 = vmatprep.mubr.f32.mxu0 %v18_v51  ;;  %657 = vmatprep.mubr.f32.mxu1 %v34_v52 }
  0x2b   :  { %416 = vperm.xlu1 %725, %v306_v53   ;;  %411 = vperm.xlu0 %724, %v305_v54  }
  0x2c   :  { %634 = vmatmul.mubr.f32.gmra.mrb[4].mxu0 %v19_v55  ;;  %658 = vmatmul.mubr.f32.gmra.mrb[4].mxu1 %v35_v56 }
  0x2d   :  { %636 = vmatprep.mubr.f32.mxu0 %v20_v57  ;;  %660 = vmatprep.mubr.f32.mxu1 %v36_v58 }
  0x2f   :  { %426 = vperm.xlu1 %725, %v308_v59   ;;  %421 = vperm.xlu0 %724, %v307_v60  }
  0x30   :  { %637 = vmatmul.mubr.f32.gmra.mrb[6].mxu0 %v21_v61  ;;  %661 = vmatmul.mubr.f32.gmra.mrb[6].mxu1 %v37_v62 }
  0x31   :  { %639 = vmatprep.mubr.f32.mxu0 %v22_v63  ;;  %663 = vmatprep.mubr.f32.mxu1 %v38_v0 }
  0x33   :  { %436 = vperm.xlu1 %725, %v310_v1   ;;  %431 = vperm.xlu0 %724, %v309_v2  }
  0x34   :  { %640 = vmatmul.mubr.f32.gmra.mrb[8].mxu0 %v23_v3  ;;  %664 = vmatmul.mubr.f32.gmra.mrb[8].mxu1 %v39_v4 }
  0x35   :  { %642 = vmatprep.mubr.f32.mxu0 %v24_v5  ;;  %666 = vmatprep.mubr.f32.mxu1 %v40_v6 }
  0x37   :  { %446 = vperm.xlu1 %725, %v312_v7   ;;  %441 = vperm.xlu0 %724, %v311_v8  }
  0x38   :  { %643 = vmatmul.mubr.f32.gmra.mrb[10].mxu0 %v25_v9  ;;  %667 = vmatmul.mubr.f32.gmra.mrb[10].mxu1 %v41_v10 }
  0x39   :  { %645 = vmatprep.mubr.f32.mxu0 %v26_v11  ;;  %669 = vmatprep.mubr.f32.mxu1 %v42_v12 }
  0x3b   :  { %456 = vperm.xlu1 %725, %v314_v13   ;;  %451 = vperm.xlu0 %724, %v313_v14  }
  0x3c   :  { %646 = vmatmul.mubr.f32.gmra.mrb[12].mxu0 %v27_v15  ;;  %670 = vmatmul.mubr.f32.gmra.mrb[12].mxu1 %v43_v16 }
  0x3d   :  { %648 = vmatprep.mubr.f32.mxu0 %v28_v17  ;;  %672 = vmatprep.mubr.f32.mxu1 %v44_v18 }
  0x3f   :  { %466 = vperm.xlu1 %725, %v316_v19   ;;  %461 = vperm.xlu0 %724, %v315_v20  }
  0x40   :  { %649 = vmatmul.mubr.f32.gmra.mrb[14].mxu0 %v29_v21  ;;  %673 = vmatmul.mubr.f32.gmra.mrb[14].mxu1 %v45_v22 }
  0x43   :  { %476 = vperm.xlu1 %725, %v318_v23   ;;  %471 = vperm.xlu0 %724, %v317_v24  }
  0x86   :  { %v332_v25 = vpop.permute.xlu1 %331  ;;  %v322_v26 = vpop.permute.xlu0 %321 }
  0x8a   :  { %v337_v27 = vpop.permute.xlu1 %336  ;;  %v327_v28 = vpop.permute.xlu0 %326 }
  0x8e   :  { %v347_v29 = vpop.permute.xlu1 %346  ;;  %v342_v30 = vpop.permute.xlu0 %341 }
  0x92   :  { %v357_v31 = vpop.permute.xlu1 %356  ;;  %v987_v32 = vpop.permute.xlu0 %351 }
  0x96   :  { %v989_v33 = vpop.permute.xlu1 %366  ;;  %v991_v34 = vpop.permute.xlu0 %361 }
  0x9a   :  { %v993_v35 = vpop.permute.xlu1 %376  ;;  %v995_v36 = vpop.permute.xlu0 %371 }
  0x9e   :  { %v997_v37 = vpop.permute.xlu1 %386  ;;  %v999_v38 = vpop.permute.xlu0 %381 }
  0xa2   :  { %v1001_v39 = vpop.permute.xlu1 %396  ;;  %v1003_v40 = vpop.permute.xlu0 %391 }
  0xa6   :  { %v407_v41 = vpop.permute.xlu1 %406  ;;  %v402_v42 = vpop.permute.xlu0 %401 }
  0xaa   :  { %v417_v43 = vpop.permute.xlu1 %416  ;;  %v412_v44 = vpop.permute.xlu0 %411 }
  0xae   :  { %v427_v45 = vpop.permute.xlu1 %426  ;;  %v422_v46 = vpop.permute.xlu0 %421 }
  0xb2   :  { %v437_v47 = vpop.permute.xlu1 %436  ;;  %v432_v48 = vpop.permute.xlu0 %431 }
  0xb6   :  { %v447_v57 = vpop.permute.xlu1 %446  ;;  %v442_v58 = vpop.permute.xlu0 %441 }
  0xba   :  { %v457_v11 = vpop.permute.xlu1 %456  ;;  %v452_v12 = vpop.permute.xlu0 %451 }
  0xf7   :  { %v629_v49 = vpop.f32.mrb[0].mxu0  ;;  %v653_v50 = vpop.f32.mrb[0].mxu1 }
  0xf8   :  { %v480_v51 = vmul.f32 %v629_v49, %v327_v28  ;;  %v496_v52 = vmul.f32 %v653_v50, %v407_v41  ;;  %v128_v53 = vpop.f32.mrb[1].mxu0  ;;  %v208_v54 = vpop.f32.mrb[1].mxu1 }
  0xf9   :  { %v479_v55 = vmul.f32 %v322_v26, %v128_v53  ;;  %v495_v56 = vmul.f32 %v402_v42, %v208_v54 }
  0xfa   :  { %512 = vst [vmem:[%s1113_s3 + $0x8] sm:$0xff] %v480_v51  ;;  %528 = vst [vmem:[%s1113_s3 + $0x88] sm:$0xff] %v496_v52 }
  0xfb   :  { %511 = vst [vmem:[%s1113_s3] sm:$0xff] %v479_v55  ;;  %527 = vst [vmem:[%s1113_s3 + $0x80] sm:$0xff] %v495_v56  ;;  %v632_v59 = vpop.f32.mrb[2].mxu0  ;;  %v656_v60 = vpop.f32.mrb[2].mxu1 }
  0xfc   :  { %v482_v61 = vmul.f32 %v632_v59, %v337_v27  ;;  %v498_v62 = vmul.f32 %v656_v60, %v417_v43  ;;  %v138_v63 = vpop.f32.mrb[3].mxu0  ;;  %v218_v0 = vpop.f32.mrb[3].mxu1 }
  0xfd   :  { %v481_v1 = vmul.f32 %v332_v25, %v138_v63  ;;  %v497_v2 = vmul.f32 %v412_v44, %v218_v0 }
  0xfe   :  { %514 = vst [vmem:[%s1113_s3 + $0x18] sm:$0xff] %v482_v61  ;;  %530 = vst [vmem:[%s1113_s3 + $0x98] sm:$0xff] %v498_v62 }
  0xff   :  { %513 = vst [vmem:[%s1113_s3 + $0x10] sm:$0xff] %v481_v1  ;;  %529 = vst [vmem:[%s1113_s3 + $0x90] sm:$0xff] %v497_v2  ;;  %v635_v3 = vpop.f32.mrb[4].mxu0  ;;  %v659_v4 = vpop.f32.mrb[4].mxu1 }
 0x100   :  { %v484_v5 = vmul.f32 %v635_v3, %v347_v29  ;;  %v500_v6 = vmul.f32 %v659_v4, %v427_v45  ;;  %v148_v7 = vpop.f32.mrb[5].mxu0  ;;  %v228_v8 = vpop.f32.mrb[5].mxu1 }
 0x101   :  { %v483_v9 = vmul.f32 %v342_v30, %v148_v7  ;;  %v499_v10 = vmul.f32 %v422_v46, %v228_v8  ;;  %v467_v29 = vpop.permute.xlu1 %466  ;;  %v462_v30 = vpop.permute.xlu0 %461 }
 0x102   :  { %516 = vst [vmem:[%s1113_s3 + $0x28] sm:$0xff] %v484_v5  ;;  %532 = vst [vmem:[%s1113_s3 + $0xa8] sm:$0xff] %v500_v6 }
 0x103   :  { %515 = vst [vmem:[%s1113_s3 + $0x20] sm:$0xff] %v483_v9  ;;  %531 = vst [vmem:[%s1113_s3 + $0xa0] sm:$0xff] %v499_v10  ;;  %v638_v13 = vpop.f32.mrb[6].mxu0  ;;  %v662_v14 = vpop.f32.mrb[6].mxu1 }
 0x104   :  { %v486_v15 = vmul.f32 %v638_v13, %v357_v31  ;;  %v502_v16 = vmul.f32 %v662_v14, %v437_v47  ;;  %v158_v17 = vpop.f32.mrb[7].mxu0  ;;  %v238_v18 = vpop.f32.mrb[7].mxu1 }
 0x105   :  { %v485_v19 = vmul.f32 %v987_v32, %v158_v17  ;;  %v501_v20 = vmul.f32 %v432_v48, %v238_v18  ;;  %v477_v51 = vpop.permute.xlu1 %476  ;;  %v472_v52 = vpop.permute.xlu0 %471 }
 0x106   :  { %518 = vst [vmem:[%s1113_s3 + $0x38] sm:$0xff] %v486_v15  ;;  %534 = vst [vmem:[%s1113_s3 + $0xb8] sm:$0xff] %v502_v16 }
 0x107   :  { %517 = vst [vmem:[%s1113_s3 + $0x30] sm:$0xff] %v485_v19  ;;  %533 = vst [vmem:[%s1113_s3 + $0xb0] sm:$0xff] %v501_v20  ;;  %v641_v21 = vpop.f32.mrb[8].mxu0  ;;  %v665_v22 = vpop.f32.mrb[8].mxu1 }
 0x108   :  { %v488_v23 = vmul.f32 %v641_v21, %v989_v33  ;;  %v504_v24 = vmul.f32 %v665_v22, %v447_v57  ;;  %v168_v25 = vpop.f32.mrb[9].mxu0  ;;  %v248_v26 = vpop.f32.mrb[9].mxu1 }
 0x109   :  { %v487_v27 = vmul.f32 %v991_v34, %v168_v25  ;;  %v503_v28 = vmul.f32 %v442_v58, %v248_v26 }
 0x10a   :  { %520 = vst [vmem:[%s1113_s3 + $0x48] sm:$0xff] %v488_v23  ;;  %536 = vst [vmem:[%s1113_s3 + $0xc8] sm:$0xff] %v504_v24 }
 0x10b   :  { %519 = vst [vmem:[%s1113_s3 + $0x40] sm:$0xff] %v487_v27  ;;  %535 = vst [vmem:[%s1113_s3 + $0xc0] sm:$0xff] %v503_v28  ;;  %v644_v31 = vpop.f32.mrb[10].mxu0  ;;  %v668_v32 = vpop.f32.mrb[10].mxu1 }
 0x10c   :  { %v490_v33 = vmul.f32 %v644_v31, %v993_v35  ;;  %v506_v34 = vmul.f32 %v668_v32, %v457_v11  ;;  %v178_v41 = vpop.f32.mrb[11].mxu0  ;;  %v258_v42 = vpop.f32.mrb[11].mxu1 }
 0x10d   :  { %v489_v43 = vmul.f32 %v995_v36, %v178_v41  ;;  %v505_v44 = vmul.f32 %v452_v12, %v258_v42 }
 0x10e   :  { %522 = vst [vmem:[%s1113_s3 + $0x58] sm:$0xff] %v490_v33  ;;  %538 = vst [vmem:[%s1113_s3 + $0xd8] sm:$0xff] %v506_v34 }
 0x10f   :  { %521 = vst [vmem:[%s1113_s3 + $0x50] sm:$0xff] %v489_v43  ;;  %537 = vst [vmem:[%s1113_s3 + $0xd0] sm:$0xff] %v505_v44  ;;  %v647_v35 = vpop.f32.mrb[12].mxu0  ;;  %v671_v45 = vpop.f32.mrb[12].mxu1 }
 0x110   :  { %v492_v36 = vmul.f32 %v647_v35, %v997_v37  ;;  %v508_v46 = vmul.f32 %v671_v45, %v467_v29  ;;  %v188_v47 = vpop.f32.mrb[13].mxu0  ;;  %v268_v48 = vpop.f32.mrb[13].mxu1 }
 0x111   :  { %v491_v49 = vmul.f32 %v999_v38, %v188_v47  ;;  %v507_v50 = vmul.f32 %v462_v30, %v268_v48 }
 0x112   :  { %524 = vst [vmem:[%s1113_s3 + $0x68] sm:$0xff] %v492_v36  ;;  %540 = vst [vmem:[%s1113_s3 + $0xe8] sm:$0xff] %v508_v46 }
 0x113   :  { %523 = vst [vmem:[%s1113_s3 + $0x60] sm:$0xff] %v491_v49  ;;  %539 = vst [vmem:[%s1113_s3 + $0xe0] sm:$0xff] %v507_v50  ;;  %v650_v37 = vpop.f32.mrb[14].mxu0  ;;  %v674_v38 = vpop.f32.mrb[14].mxu1 }
 0x114   :  { %v494_v53 = vmul.f32 %v650_v37, %v1001_v39  ;;  %v510_v54 = vmul.f32 %v674_v38, %v477_v51  ;;  %v198_v55 = vpop.f32.mrb[15].mxu0  ;;  %v278_v56 = vpop.f32.mrb[15].mxu1 }
 0x115   :  { %v493_v57 = vmul.f32 %v1003_v40, %v198_v55  ;;  %v509_v58 = vmul.f32 %v472_v52, %v278_v56 }
 0x116   :  { %526 = vst [vmem:[%s1113_s3 + $0x78] sm:$0xff] %v494_v53  ;;  %542 = vst [vmem:[%s1113_s3 + $0xf8] sm:$0xff] %v510_v54 }
 0x117   :  { %525 = vst [vmem:[%s1113_s3 + $0x70] sm:$0xff] %v493_v57  ;;  %541 = vst [vmem:[%s1113_s3 + $0xf0] sm:$0xff] %v509_v58 }

</bundles_post_ra>
